<compile_context>
chip_gen: v5e
topology: v5e:2x2
jax: 0.10.0
libtpu: 0.0.40
codegen_flags: <defaults>
</compile_context>

<pallas_src>
import jax
import jax.numpy as jnp
from jax.experimental import pallas as pl
from jax.experimental.pallas import tpu as pltpu

# ----- Model hyper-parameters (the module leaves these to the user; pick small ones) -----
LATENT_DIM = 32
IMG_SHAPE = (1, 16, 16)          # (C, H, W)
IMG_FLAT = 1 * 16 * 16           # 256
HIDDEN = (128, 256, 512)
BN_EPS = 1e-5
LRELU_SLOPE = 0.2

# Packed small-parameter layout: one (8, 512) f32 array.
#   row 0: gamma1[:128]   row 1: beta1[:128]
#   row 2: gamma2[:256]   row 3: beta2[:256]
#   row 4: gamma3[:512]   row 5: beta3[:512]
#   row 6: bias4[:256]    row 7: unused padding
SP_ROWS = 8
SP_COLS = max(max(HIDDEN), IMG_FLAT)   # 512


def _use_bf16_elementwise():
    """bf16 VALU exists on v6e/v7x; keep f32 elementwise on older chips (v5e etc.)."""
    try:
        kind = jax.devices()[0].device_kind.lower()
    except Exception:
        return True
    for old in ("v2", "v3", "v4", "v5"):
        if old in kind:
            return False
    return True


def _make_kernel(b_real, b_pad, bf16_elem):
    """Build the fused-MLP kernel for a given (real, padded) batch size."""
    need_mask = (b_pad != b_real)
    inv_b = 1.0 / b_real  # static constant

    def kernel(z_ref, w1_ref, w2_ref, w3_ref, w4_ref, sp_ref, out_ref):
        if need_mask:
            row_valid = (jax.lax.broadcasted_iota(jnp.int32, (b_pad, 1), 0) < b_real)
        else:
            row_valid = None

        def dot_bf16(x_bf16, w_ref):
            # bf16 x bf16 on the MXU, f32 accumulation.
            return jnp.dot(x_bf16, w_ref[...], preferred_element_type=jnp.float32)

        def bn_lrelu(h_f32, gamma, beta):
            # Training-mode BatchNorm1d stats (biased variance over the real batch).
            # Padded rows of h_f32 are exactly zero, so they contribute nothing.
            s = jnp.sum(h_f32, axis=0, keepdims=True)
            ss = jnp.sum(h_f32 * h_f32, axis=0, keepdims=True)
            mean = s * inv_b
            var = jnp.maximum(ss * inv_b - mean * mean, 0.0)   # clamp: avoid rsqrt(<0)
            a = jax.lax.rsqrt(var + BN_EPS) * gamma            # folded scale
            b = beta - mean * a                                # folded shift
            if bf16_elem:
                h = h_f32.astype(jnp.bfloat16)
                hn = h * a.astype(jnp.bfloat16) + b.astype(jnp.bfloat16)
                act = jnp.maximum(hn, LRELU_SLOPE * hn)
                if need_mask:
                    act = jnp.where(row_valid, act, 0.0)       # keep padded rows zero
                return act
            else:
                hn = h_f32 * a + b
                act = jnp.maximum(hn, LRELU_SLOPE * hn)
                if need_mask:
                    act = jnp.where(row_valid, act, 0.0)
                return act.astype(jnp.bfloat16)

        # Static ref slices of the packed small params (zero-cost views), hoisted once.
        g1 = sp_ref[0:1, 0:HIDDEN[0]]
        be1 = sp_ref[1:2, 0:HIDDEN[0]]
        g2 = sp_ref[2:3, 0:HIDDEN[1]]
        be2 = sp_ref[3:4, 0:HIDDEN[1]]
        g3 = sp_ref[4:5, 0:HIDDEN[2]]
        be3 = sp_ref[5:6, 0:HIDDEN[2]]
        bias4 = sp_ref[6:7, 0:IMG_FLAT]

        # NOTE: pre-BN linear biases are omitted -- BN mean subtraction cancels them.
        h1 = bn_lrelu(dot_bf16(z_ref[...], w1_ref), g1, be1)
        h2 = bn_lrelu(dot_bf16(h1, w2_ref), g2, be2)
        h3 = bn_lrelu(dot_bf16(h2, w3_ref), g3, be3)

        logits = dot_bf16(h3, w4_ref) + bias4
        # sigmoid(x) = 0.5 * tanh(0.5 x) + 0.5  -> single EUP transcendental.
        out_ref[...] = (0.5 * jnp.tanh(0.5 * logits) + 0.5).astype(out_ref.dtype)

    return kernel


def generator_forward(z, params):
    """z: (B, LATENT_DIM) float -> img: (B, *IMG_SHAPE) float32."""
    w1, w2, w3, w4, small_pack = params
    b_real = z.shape[0]
    # Pad batch to a multiple of 16 (bf16 sublane packing).  For real throughput,
    # callers should raise B toward >=128 (v5e) / >=256 (v6e/v7x) MXU rows.
    b_pad = max(16, ((b_real + 15) // 16) * 16)

    z_bf = z.astype(jnp.bfloat16)
    if b_pad != b_real:
        z_bf = jnp.pad(z_bf, ((0, b_pad - b_real), (0, 0)))

    kernel = _make_kernel(b_real, b_pad, _use_bf16_elementwise())
    flat_args = (z_bf, w1, w2, w3, w4, small_pack)

    def full_spec(a):
        nd = a.ndim
        return pl.BlockSpec(a.shape, lambda *_: (0,) * nd)

    out_flat = pl.pallas_call(
        kernel,
        out_shape=jax.ShapeDtypeStruct((b_pad, IMG_FLAT), jnp.float32),
        grid=(1,),
        in_specs=[full_spec(a) for a in flat_args],
        out_specs=pl.BlockSpec((b_pad, IMG_FLAT), lambda *_: (0, 0)),
        compiler_params=pltpu.CompilerParams(
            dimension_semantics=("arbitrary",),
            # ~0.6 MB bf16 weights + activations; fits v5e/v6e (128 MiB) and
            # v7x (64 MiB physical).  Caps resident B at a few thousand; past
            # that, tile the batch and pin weights via index_map -> (0, 0).
            vmem_limit_bytes=32 * 1024 * 1024,
        ),
    )(*flat_args)

    return out_flat[:b_real].reshape(b_real, *IMG_SHAPE)


def init_params(key):
    """PyTorch-default-style init (U(-1/sqrt(fan_in), +)); weights stored in bf16."""
    dims = (LATENT_DIM,) + HIDDEN + (IMG_FLAT,)
    keys = jax.random.split(key, 5)
    weights = []
    for li in range(4):
        fan_in, fan_out = dims[li], dims[li + 1]
        bound = 1.0 / (fan_in ** 0.5)
        w = jax.random.uniform(keys[li], (fan_in, fan_out),
                               minval=-bound, maxval=bound, dtype=jnp.float32)
        weights.append(w.astype(jnp.bfloat16))

    # Final-layer bias (the only surviving linear bias).
    bound4 = 1.0 / (dims[3] ** 0.5)
    b4 = jax.random.uniform(keys[4], (IMG_FLAT,),
                            minval=-bound4, maxval=bound4, dtype=jnp.float32)

    # Packed small params: gammas = 1, betas = 0, row 6 = final bias.
    sp = jnp.zeros((SP_ROWS, SP_COLS), jnp.float32)
    sp = sp.at[0, :HIDDEN[0]].set(1.0)   # gamma1
    sp = sp.at[2, :HIDDEN[1]].set(1.0)   # gamma2
    sp = sp.at[4, :HIDDEN[2]].set(1.0)   # gamma3
    sp = sp.at[6, :IMG_FLAT].set(b4)     # bias4
    return (weights[0], weights[1], weights[2], weights[3], sp)


if __name__ == "__main__":
    key = jax.random.PRNGKey(0)
    pkey, zkey = jax.random.split(key)

    params = init_params(pkey)

    B = 16  # multiple of 16 (bf16 sublane packing); raise toward 128/256 for MXU utilization
    z = jax.random.normal(zkey, (B, LATENT_DIM), dtype=jnp.float32)

    img = generator_forward(z, params)
    jax.block_until_ready(img)

    assert img.shape == (B, *IMG_SHAPE), img.shape
    assert bool(jnp.all((img >= 0.0) & (img <= 1.0)))   # sigmoid range sanity check
    assert bool(jnp.all(jnp.isfinite(img)))             # variance-clamp sanity check
    print("KERNEL_OK")
</pallas_src>

<mosaic_0001>
module attributes {stable_mosaic.version = 11 : i64} {
  func.func @kernel(%arg0: i32, %arg1: memref<16x32xbf16, #tpu.memory_space<vmem>>, %arg2: memref<32x128xbf16, #tpu.memory_space<vmem>>, %arg3: memref<128x256xbf16, #tpu.memory_space<vmem>>, %arg4: memref<256x512xbf16, #tpu.memory_space<vmem>>, %arg5: memref<512x256xbf16, #tpu.memory_space<vmem>>, %arg6: memref<8x512xf32, #tpu.memory_space<vmem>>, %arg7: memref<16x256xf32, #tpu.memory_space<vmem>>) attributes {dimension_semantics = [#tpu.dimension_semantics<arbitrary>], iteration_bounds = array<i64: 1>, scalar_prefetch = 0 : i64, scratch_operands = 0 : i64, tpu.core_type = #tpu.core_type<tc>, window_params = [{pipeline_mode = #tpu.pipeline_mode<synchronous>, transform_indices = @transform_0, window_bounds = array<i64: 16, 32>}, {pipeline_mode = #tpu.pipeline_mode<synchronous>, transform_indices = @transform_1, window_bounds = array<i64: 32, 128>}, {pipeline_mode = #tpu.pipeline_mode<synchronous>, transform_indices = @transform_2, window_bounds = array<i64: 128, 256>}, {pipeline_mode = #tpu.pipeline_mode<synchronous>, transform_indices = @transform_3, window_bounds = array<i64: 256, 512>}, {pipeline_mode = #tpu.pipeline_mode<synchronous>, transform_indices = @transform_4, window_bounds = array<i64: 512, 256>}, {pipeline_mode = #tpu.pipeline_mode<synchronous>, transform_indices = @transform_5, window_bounds = array<i64: 8, 512>}, {pipeline_mode = #tpu.pipeline_mode<synchronous>, transform_indices = @transform_6, window_bounds = array<i64: 16, 256>}]} {
    %c0 = arith.constant 0 : index
    %c0_0 = arith.constant 0 : index
    %0 = vector.load %arg6[%c0, %c0_0] : memref<8x512xf32, #tpu.memory_space<vmem>>, vector<1x128xf32>
    %c1 = arith.constant 1 : index
    %c0_1 = arith.constant 0 : index
    %1 = vector.load %arg6[%c1, %c0_1] : memref<8x512xf32, #tpu.memory_space<vmem>>, vector<1x128xf32>
    %c2 = arith.constant 2 : index
    %c0_2 = arith.constant 0 : index
    %2 = vector.load %arg6[%c2, %c0_2] : memref<8x512xf32, #tpu.memory_space<vmem>>, vector<1x256xf32>
    %c3 = arith.constant 3 : index
    %c0_3 = arith.constant 0 : index
    %3 = vector.load %arg6[%c3, %c0_3] : memref<8x512xf32, #tpu.memory_space<vmem>>, vector<1x256xf32>
    %c4 = arith.constant 4 : index
    %c0_4 = arith.constant 0 : index
    %4 = vector.load %arg6[%c4, %c0_4] : memref<8x512xf32, #tpu.memory_space<vmem>>, vector<1x512xf32>
    %c5 = arith.constant 5 : index
    %c0_5 = arith.constant 0 : index
    %5 = vector.load %arg6[%c5, %c0_5] : memref<8x512xf32, #tpu.memory_space<vmem>>, vector<1x512xf32>
    %c6 = arith.constant 6 : index
    %c0_6 = arith.constant 0 : index
    %6 = vector.load %arg6[%c6, %c0_6] : memref<8x512xf32, #tpu.memory_space<vmem>>, vector<1x256xf32>
    %c0_7 = arith.constant 0 : index
    %c0_8 = arith.constant 0 : index
    %7 = vector.load %arg1[%c0_7, %c0_8] : memref<16x32xbf16, #tpu.memory_space<vmem>>, vector<16x32xbf16>
    %c0_9 = arith.constant 0 : index
    %c0_10 = arith.constant 0 : index
    %8 = vector.load %arg2[%c0_9, %c0_10] : memref<32x128xbf16, #tpu.memory_space<vmem>>, vector<32x128xbf16>
    %cst = arith.constant dense<0.000000e+00> : vector<16x128xf32>
    %9 = tpu.matmul %7, %8, %cst {dimension_numbers = #tpu.dot_dimension_numbers<[1], [0], [0], [1], [0, 0, 1, 1], [], []>} : vector<16x32xbf16>, vector<32x128xbf16>, vector<16x128xf32> -> vector<16x128xf32>
    %cst_11 = arith.constant dense<0.000000e+00> : vector<128xf32>
    %10 = vector.multi_reduction <add>, %9, %cst_11 [0] : vector<16x128xf32> to vector<128xf32>
    %11 = vector.shape_cast %10 : vector<128xf32> to vector<1x128xf32>
    %12 = arith.mulf %9, %9 : vector<16x128xf32>
    %cst_12 = arith.constant dense<0.000000e+00> : vector<128xf32>
    %13 = vector.multi_reduction <add>, %12, %cst_12 [0] : vector<16x128xf32> to vector<128xf32>
    %14 = vector.shape_cast %13 : vector<128xf32> to vector<1x128xf32>
    %cst_13 = arith.constant 6.250000e-02 : f32
    %15 = vector.broadcast %cst_13 : f32 to vector<1x128xf32>
    %16 = arith.mulf %11, %15 : vector<1x128xf32>
    %cst_14 = arith.constant 6.250000e-02 : f32
    %17 = vector.broadcast %cst_14 : f32 to vector<1x128xf32>
    %18 = arith.mulf %14, %17 : vector<1x128xf32>
    %19 = arith.mulf %16, %16 : vector<1x128xf32>
    %20 = arith.subf %18, %19 : vector<1x128xf32>
    %cst_15 = arith.constant 0.000000e+00 : f32
    %21 = vector.broadcast %cst_15 : f32 to vector<1x128xf32>
    %22 = arith.maximumf %20, %21 : vector<1x128xf32>
    %cst_16 = arith.constant 9.99999974E-6 : f32
    %23 = vector.broadcast %cst_16 : f32 to vector<1x128xf32>
    %24 = arith.addf %22, %23 : vector<1x128xf32>
    %25 = math.rsqrt %24 : vector<1x128xf32>
    %26 = arith.mulf %25, %0 : vector<1x128xf32>
    %27 = arith.mulf %16, %26 : vector<1x128xf32>
    %28 = arith.subf %1, %27 : vector<1x128xf32>
    %29 = arith.truncf %9 : vector<16x128xf32> to vector<16x128xbf16>
    %30 = arith.truncf %26 : vector<1x128xf32> to vector<1x128xbf16>
    %31 = vector.broadcast %30 : vector<1x128xbf16> to vector<16x128xbf16>
    %32 = arith.mulf %29, %31 : vector<16x128xbf16>
    %33 = arith.truncf %28 : vector<1x128xf32> to vector<1x128xbf16>
    %34 = vector.broadcast %33 : vector<1x128xbf16> to vector<16x128xbf16>
    %35 = arith.addf %32, %34 : vector<16x128xbf16>
    %cst_17 = arith.constant 2.001950e-01 : bf16
    %36 = vector.broadcast %cst_17 : bf16 to vector<16x128xbf16>
    %37 = arith.mulf %36, %35 : vector<16x128xbf16>
    %38 = arith.maximumf %35, %37 : vector<16x128xbf16>
    %c0_18 = arith.constant 0 : index
    %c0_19 = arith.constant 0 : index
    %39 = vector.load %arg3[%c0_18, %c0_19] : memref<128x256xbf16, #tpu.memory_space<vmem>>, vector<128x256xbf16>
    %cst_20 = arith.constant dense<0.000000e+00> : vector<16x256xf32>
    %40 = tpu.matmul %38, %39, %cst_20 {dimension_numbers = #tpu.dot_dimension_numbers<[1], [0], [0], [1], [0, 0, 1, 1], [], []>} : vector<16x128xbf16>, vector<128x256xbf16>, vector<16x256xf32> -> vector<16x256xf32>
    %cst_21 = arith.constant dense<0.000000e+00> : vector<256xf32>
    %41 = vector.multi_reduction <add>, %40, %cst_21 [0] : vector<16x256xf32> to vector<256xf32>
    %42 = vector.shape_cast %41 : vector<256xf32> to vector<1x256xf32>
    %43 = arith.mulf %40, %40 : vector<16x256xf32>
    %cst_22 = arith.constant dense<0.000000e+00> : vector<256xf32>
    %44 = vector.multi_reduction <add>, %43, %cst_22 [0] : vector<16x256xf32> to vector<256xf32>
    %45 = vector.shape_cast %44 : vector<256xf32> to vector<1x256xf32>
    %cst_23 = arith.constant 6.250000e-02 : f32
    %46 = vector.broadcast %cst_23 : f32 to vector<1x256xf32>
    %47 = arith.mulf %42, %46 : vector<1x256xf32>
    %cst_24 = arith.constant 6.250000e-02 : f32
    %48 = vector.broadcast %cst_24 : f32 to vector<1x256xf32>
    %49 = arith.mulf %45, %48 : vector<1x256xf32>
    %50 = arith.mulf %47, %47 : vector<1x256xf32>
    %51 = arith.subf %49, %50 : vector<1x256xf32>
    %cst_25 = arith.constant 0.000000e+00 : f32
    %52 = vector.broadcast %cst_25 : f32 to vector<1x256xf32>
    %53 = arith.maximumf %51, %52 : vector<1x256xf32>
    %cst_26 = arith.constant 9.99999974E-6 : f32
    %54 = vector.broadcast %cst_26 : f32 to vector<1x256xf32>
    %55 = arith.addf %53, %54 : vector<1x256xf32>
    %56 = math.rsqrt %55 : vector<1x256xf32>
    %57 = arith.mulf %56, %2 : vector<1x256xf32>
    %58 = arith.mulf %47, %57 : vector<1x256xf32>
    %59 = arith.subf %3, %58 : vector<1x256xf32>
    %60 = arith.truncf %40 : vector<16x256xf32> to vector<16x256xbf16>
    %61 = arith.truncf %57 : vector<1x256xf32> to vector<1x256xbf16>
    %62 = vector.broadcast %61 : vector<1x256xbf16> to vector<16x256xbf16>
    %63 = arith.mulf %60, %62 : vector<16x256xbf16>
    %64 = arith.truncf %59 : vector<1x256xf32> to vector<1x256xbf16>
    %65 = vector.broadcast %64 : vector<1x256xbf16> to vector<16x256xbf16>
    %66 = arith.addf %63, %65 : vector<16x256xbf16>
    %cst_27 = arith.constant 2.001950e-01 : bf16
    %67 = vector.broadcast %cst_27 : bf16 to vector<16x256xbf16>
    %68 = arith.mulf %67, %66 : vector<16x256xbf16>
    %69 = arith.maximumf %66, %68 : vector<16x256xbf16>
    %c0_28 = arith.constant 0 : index
    %c0_29 = arith.constant 0 : index
    %70 = vector.load %arg4[%c0_28, %c0_29] : memref<256x512xbf16, #tpu.memory_space<vmem>>, vector<256x512xbf16>
    %cst_30 = arith.constant dense<0.000000e+00> : vector<16x512xf32>
    %71 = tpu.matmul %69, %70, %cst_30 {dimension_numbers = #tpu.dot_dimension_numbers<[1], [0], [0], [1], [0, 0, 1, 1], [], []>} : vector<16x256xbf16>, vector<256x512xbf16>, vector<16x512xf32> -> vector<16x512xf32>
    %cst_31 = arith.constant dense<0.000000e+00> : vector<512xf32>
    %72 = vector.multi_reduction <add>, %71, %cst_31 [0] : vector<16x512xf32> to vector<512xf32>
    %73 = vector.shape_cast %72 : vector<512xf32> to vector<1x512xf32>
    %74 = arith.mulf %71, %71 : vector<16x512xf32>
    %cst_32 = arith.constant dense<0.000000e+00> : vector<512xf32>
    %75 = vector.multi_reduction <add>, %74, %cst_32 [0] : vector<16x512xf32> to vector<512xf32>
    %76 = vector.shape_cast %75 : vector<512xf32> to vector<1x512xf32>
    %cst_33 = arith.constant 6.250000e-02 : f32
    %77 = vector.broadcast %cst_33 : f32 to vector<1x512xf32>
    %78 = arith.mulf %73, %77 : vector<1x512xf32>
    %cst_34 = arith.constant 6.250000e-02 : f32
    %79 = vector.broadcast %cst_34 : f32 to vector<1x512xf32>
    %80 = arith.mulf %76, %79 : vector<1x512xf32>
    %81 = arith.mulf %78, %78 : vector<1x512xf32>
    %82 = arith.subf %80, %81 : vector<1x512xf32>
    %cst_35 = arith.constant 0.000000e+00 : f32
    %83 = vector.broadcast %cst_35 : f32 to vector<1x512xf32>
    %84 = arith.maximumf %82, %83 : vector<1x512xf32>
    %cst_36 = arith.constant 9.99999974E-6 : f32
    %85 = vector.broadcast %cst_36 : f32 to vector<1x512xf32>
    %86 = arith.addf %84, %85 : vector<1x512xf32>
    %87 = math.rsqrt %86 : vector<1x512xf32>
    %88 = arith.mulf %87, %4 : vector<1x512xf32>
    %89 = arith.mulf %78, %88 : vector<1x512xf32>
    %90 = arith.subf %5, %89 : vector<1x512xf32>
    %91 = arith.truncf %71 : vector<16x512xf32> to vector<16x512xbf16>
    %92 = arith.truncf %88 : vector<1x512xf32> to vector<1x512xbf16>
    %93 = vector.broadcast %92 : vector<1x512xbf16> to vector<16x512xbf16>
    %94 = arith.mulf %91, %93 : vector<16x512xbf16>
    %95 = arith.truncf %90 : vector<1x512xf32> to vector<1x512xbf16>
    %96 = vector.broadcast %95 : vector<1x512xbf16> to vector<16x512xbf16>
    %97 = arith.addf %94, %96 : vector<16x512xbf16>
    %cst_37 = arith.constant 2.001950e-01 : bf16
    %98 = vector.broadcast %cst_37 : bf16 to vector<16x512xbf16>
    %99 = arith.mulf %98, %97 : vector<16x512xbf16>
    %100 = arith.maximumf %97, %99 : vector<16x512xbf16>
    %c0_38 = arith.constant 0 : index
    %c0_39 = arith.constant 0 : index
    %101 = vector.load %arg5[%c0_38, %c0_39] : memref<512x256xbf16, #tpu.memory_space<vmem>>, vector<512x256xbf16>
    %cst_40 = arith.constant dense<0.000000e+00> : vector<16x256xf32>
    %102 = tpu.matmul %100, %101, %cst_40 {dimension_numbers = #tpu.dot_dimension_numbers<[1], [0], [0], [1], [0, 0, 1, 1], [], []>} : vector<16x512xbf16>, vector<512x256xbf16>, vector<16x256xf32> -> vector<16x256xf32>
    %103 = vector.broadcast %6 : vector<1x256xf32> to vector<16x256xf32>
    %104 = arith.addf %102, %103 : vector<16x256xf32>
    %cst_41 = arith.constant 5.000000e-01 : f32
    %105 = vector.broadcast %cst_41 : f32 to vector<16x256xf32>
    %106 = arith.mulf %105, %104 : vector<16x256xf32>
    %107 = math.tanh %106 : vector<16x256xf32>
    %cst_42 = arith.constant 5.000000e-01 : f32
    %108 = vector.broadcast %cst_42 : f32 to vector<16x256xf32>
    %109 = arith.mulf %108, %107 : vector<16x256xf32>
    %cst_43 = arith.constant 5.000000e-01 : f32
    %110 = vector.broadcast %cst_43 : f32 to vector<16x256xf32>
    %111 = arith.addf %109, %110 : vector<16x256xf32>
    %c0_44 = arith.constant 0 : index
    %c0_45 = arith.constant 0 : index
    %112 = vector.load %arg7[%c0_44, %c0_45] : memref<16x256xf32, #tpu.memory_space<vmem>>, vector<16x256xf32>
    tpu.vector_store %arg7[%c0_44, %c0_45], %111 {strides = array<i32>} : memref<16x256xf32, #tpu.memory_space<vmem>>, vector<16x256xf32>,
    return
  }
  func.func @transform_0(%arg0: i32) -> (i32, i32) {
    %c0_i32 = arith.constant 0 : i32
    %c0_i32_0 = arith.constant 0 : i32
    %c0_i32_1 = arith.constant 0 : i32
    return %c0_i32, %c0_i32_0 : i32, i32
  }
  func.func @transform_1(%arg0: i32) -> (i32, i32) {
    %c0_i32 = arith.constant 0 : i32
    %c0_i32_0 = arith.constant 0 : i32
    %c0_i32_1 = arith.constant 0 : i32
    return %c0_i32, %c0_i32_0 : i32, i32
  }
  func.func @transform_2(%arg0: i32) -> (i32, i32) {
    %c0_i32 = arith.constant 0 : i32
    %c0_i32_0 = arith.constant 0 : i32
    %c0_i32_1 = arith.constant 0 : i32
    return %c0_i32, %c0_i32_0 : i32, i32
  }
  func.func @transform_3(%arg0: i32) -> (i32, i32) {
    %c0_i32 = arith.constant 0 : i32
    %c0_i32_0 = arith.constant 0 : i32
    %c0_i32_1 = arith.constant 0 : i32
    return %c0_i32, %c0_i32_0 : i32, i32
  }
  func.func @transform_4(%arg0: i32) -> (i32, i32) {
    %c0_i32 = arith.constant 0 : i32
    %c0_i32_0 = arith.constant 0 : i32
    %c0_i32_1 = arith.constant 0 : i32
    return %c0_i32, %c0_i32_0 : i32, i32
  }
  func.func @transform_5(%arg0: i32) -> (i32, i32) {
    %c0_i32 = arith.constant 0 : i32
    %c0_i32_0 = arith.constant 0 : i32
    %c0_i32_1 = arith.constant 0 : i32
    return %c0_i32, %c0_i32_0 : i32, i32
  }
  func.func @transform_6(%arg0: i32) -> (i32, i32) {
    %c0_i32 = arith.constant 0 : i32
    %c0_i32_0 = arith.constant 0 : i32
    %c0_i32_1 = arith.constant 0 : i32
    return %c0_i32, %c0_i32_0 : i32, i32
  }
}

</mosaic_0001>

<bundles_post_ra>
// kernel: tpu_custom_call.1
= control target key start
LH: loop header
LB: loop body
LE: loop exit
PB: predicated region body
PF: predicated region fallthrough
CT: control target
= control target key end

     0   :  { %11 = vsyncpa [#allocation3], 0  ;;  %s3211_s0 = inlined_call_operand.hbm [shape: bf16[16,32], index: 0, kind: input, shape index: {}]   ;;  %s3212_s1 = inlined_call_operand.hbm [shape: bf16[32,128], index: 1, kind: input, shape index: {}]   ;;  %s3213_s2 = inlined_call_operand.hbm [shape: bf16[128,256], index: 2, kind: input, shape index: {}]   ;;  %s3214_s3 = inlined_call_operand.hbm [shape: bf16[256,512], index: 3, kind: input, shape index: {}]   ;;  %s3215_s4 = inlined_call_operand.hbm [shape: bf16[512,256], index: 4, kind: input, shape index: {}]   ;;  %s3216_s5 = inlined_call_operand.hbm [shape: f32[8,512], index: 5, kind: input, shape index: {}]   ;;  %s3217_s6 = inlined_call_operand.hbm [shape: f32[16,256], index: 6, kind: output, shape index: {}]  }
   0x1   :  { %12 = vsyncpa [#allocation6], 0 }
   0x2   :  { %13 = vsyncpa [#allocation9], 0 }
   0x3   :  { %14 = vsyncpa [#allocation12], 0 }
   0x4   :  { %15 = vsyncpa [#allocation4], 0  ;;  %s33_s23 = sshll.u32 %s3212_s1, 4  ;;  %s2821_s24 = smov [#allocation5]   ;;  %s34_s23 = int_to_ptr.hbm [resolvable:$true] %s33_s23 }
   0x5   :  { %s35_s25 = sshll.u32 %s2821_s24, 4  ;;  %s59_s28 = sshll.u32 %s3214_s3, 4  ;;  %s36_s25 = int_to_ptr.vmem [resolvable:$true] %s35_s25  ;;  %s60_s28 = int_to_ptr.hbm [resolvable:$true] %s59_s28 }
   0x6   :  { %s2822_s29 = smov 64   ;;  %s2823_s30 = smov 4  }
   0x7   :  { %41 = dma.hbm_to_vmem [thread:$0]  %s34_s23, 256, %s36_s25, [#allocation6], %s2822_s29, %s2822_s29, %s2823_s30  }
   0x8   :  { %s2824_s7 = smov [#allocation8]   ;;  %s2825_s9 = smov 256  }
   0x9   :  { %s61_s8 = sshll.u32 %s2824_s7, 4  ;;  %s2826_s10 = smov 16   ;;  %s62_s8 = int_to_ptr.vmem [resolvable:$true] %s61_s8 }
   0xa   :  { %67 = dma.hbm_to_vmem [thread:$0]  %s60_s28, 8192, %s62_s8, [#allocation9], %s2825_s9, %s2825_s9, %s2826_s10  }
   0xb   :  { %s20_s12 = sshll.u32 %s3211_s0, 4  ;;  %s2827_s13 = smov [#allocation2]   ;;  %s21_s12 = int_to_ptr.hbm [resolvable:$true] %s20_s12 }
   0xc   :  { %s22_s3 = sshll.u32 %s2827_s13, 4  ;;  %s46_s16 = sshll.u32 %s3213_s2, 4  ;;  %s23_s3 = int_to_ptr.vmem [resolvable:$true] %s22_s3  ;;  %s47_s16 = int_to_ptr.hbm [resolvable:$true] %s46_s16 }
   0xd   :  { %28 = dma.hbm_to_vmem [thread:$0]  %s21_s12, 128, %s23_s3, [#allocation3], %s2822_s29, %s2822_s29, %s2823_s30  }
   0xe   :  { %s2828_s17 = smov [#allocation7]   ;;  %s2829_s19 = smov 128  }
   0xf   :  { %s48_s18 = sshll.u32 %s2828_s17, 4  ;;  %s2830_s20 = smov 8   ;;  %s49_s18 = int_to_ptr.vmem [resolvable:$true] %s48_s18 }
  0x10   :  { %54 = dma.hbm_to_vmem [thread:$0]  %s47_s16, 2048, %s49_s18, [#allocation6], %s2829_s19, %s2829_s19, %s2830_s20  }
  0x11   :  { %s72_s0 = sshll.u32 %s3215_s4, 4  ;;  %s2831_s23 = smov [#allocation10]   ;;  %s73_s0 = int_to_ptr.hbm [resolvable:$true] %s72_s0 }
  0x12   :  { %s74_s24 = sshll.u32 %s2831_s23, 4  ;;  %s86_s2 = sshll.u32 %s3216_s5, 4  ;;  %s75_s24 = int_to_ptr.vmem [resolvable:$true] %s74_s24  ;;  %s87_s2 = int_to_ptr.hbm [resolvable:$true] %s86_s2 }
  0x13   :  { %80 = dma.hbm_to_vmem [thread:$0]  %s73_s0, 8192, %s75_s24, [#allocation9], %s2829_s19, %s2829_s19, %s2830_s20  }
  0x14   :  { %s2832_s27 = smov [#allocation11]  }
  0x15   :  { %s88_s28 = sshll.u32 %s2832_s27, 4  ;;  %s89_s28 = int_to_ptr.vmem [resolvable:$true] %s88_s28 }
  0x16   :  { %91 = dma.hbm_to_vmem [thread:$0]  %s87_s2, 512, %s89_s28, [#allocation12]  }
  0x17   :  { %2811 = dma.done.wait [#allocation3], 128  }
  0x18   :  { %2812 = vsyncadd [#allocation3], 4294967168 }
  0x19   :  { %2813 = dma.done.wait [#allocation6], 2304  }
  0x1a   :  { %2814 = vsyncadd [#allocation6], 4294964992 }
  0x1b   :  { %2815 = dma.done.wait [#allocation9], 16384  }
  0x1c   :  { %2816 = vsyncadd [#allocation9], 4294950912 }
  0x1d   :  { %2817 = dma.done.wait [#allocation12], 512  }
  0x1e   :  { %2818 = vsyncadd [#allocation12], 4294966784  ;;  %v2463_v0 = vld [vmem:[#allocation5 + $0x8] sm:$0xff]  ;;  %v2462_v1 = vld [vmem:[#allocation5] sm:$0xff]  ;;  %vm152_vm0 = vcmask 261120   ;;  %vm434_vm10 = vcmask 1040384  }
  0x1f   :  { %162 = vmatpush.bf16.msra.mxu0 %v2463_v0  ;;  %v2461_v2 = vld [vmem:[#allocation2] sm:$0xff]  ;;  %v1943_v8 = vld [vmem:[#allocation7 + $0x70] sm:$0xf]  ;;  %v2479_v9 = vld [vmem:[#allocation7 + $0x74] sm:$0xf0]  ;;  %s2833_s4 = smov [#allocation13]  }
  0x20   :  { %v2478_v10 = vld [vmem:[#allocation7 + $0x74] sm:$0xf]  ;;  %v1944_v11 = vor.u32 %v2479_v9, %v1943_v8  ;;  %v1945_v12 = vld [vmem:[#allocation7 + $0x78] sm:$0xf0]  ;;  %v1935_v18 = vld [vmem:[#allocation7 + $0x60] sm:$0xf] }
  0x21   :  { %v1948_v15 = vor.u32 %v2478_v10, %v1945_v12  ;;  %v2477_v19 = vld [vmem:[#allocation7 + $0x64] sm:$0xf0]  ;;  %v2476_v21 = vld [vmem:[#allocation7 + $0x64] sm:$0xf]  ;;  %v1937_v22 = vld [vmem:[#allocation7 + $0x68] sm:$0xf0] }
  0x22   :  { %330 = vmatpush.bf16.msra.mxu1 %v1944_v11  ;;  %v1936_v20 = vor.u32 %v2477_v19, %v1935_v18  ;;  %v1940_v25 = vor.u32 %v2476_v21, %v1937_v22  ;;  %v1927_v28 = vld [vmem:[#allocation7 + $0x50] sm:$0xf]  ;;  %v2475_v29 = vld [vmem:[#allocation7 + $0x54] sm:$0xf0]  ;;  %v2474_v31 = vld [vmem:[#allocation7 + $0x54] sm:$0xf] }
  0x23   :  { %163 = vmatpush.bf16.msra.mxu0 %v2462_v1  ;;  %344 = vmatpush.bf16.msra.mxu2 %v1948_v15  ;;  %v1928_v30 = vor.u32 %v2475_v29, %v1927_v28  ;;  %v1929_v32 = vld [vmem:[#allocation7 + $0x58] sm:$0xf0]  ;;  %v1919_v38 = vld [vmem:[#allocation7 + $0x40] sm:$0xf]  ;;  %v2473_v39 = vld [vmem:[#allocation7 + $0x44] sm:$0xf0] }
  0x24   :  { %v1932_v35 = vor.u32 %v2474_v31, %v1929_v32  ;;  %v1920_v40 = vor.u32 %v2473_v39, %v1919_v38  ;;  %v2472_v41 = vld [vmem:[#allocation7 + $0x44] sm:$0xf]  ;;  %v1921_v42 = vld [vmem:[#allocation7 + $0x48] sm:$0xf0]  ;;  %v1911_v48 = vld [vmem:[#allocation7 + $0x30] sm:$0xf] }
  0x25   :  { %v1924_v45 = vor.u32 %v2472_v41, %v1921_v42  ;;  %v2471_v49 = vld [vmem:[#allocation7 + $0x34] sm:$0xf0]  ;;  %v2470_v51 = vld [vmem:[#allocation7 + $0x34] sm:$0xf]  ;;  %v1913_v52 = vld [vmem:[#allocation7 + $0x38] sm:$0xf0] }
  0x26   :  { %1884 = vmatmul.msk.bf16.vlgmr.msra.gmra.mxu0 %vm152_vm0, %v2461_v2  ;;  %331 = vmatpush.bf16.msra.mxu1 %v1936_v20  ;;  %v1912_v50 = vor.u32 %v2471_v49, %v1911_v48  ;;  %v1916_v54 = vor.u32 %v2470_v51, %v1913_v52  ;;  %v1903_v56 = vld [vmem:[#allocation7 + $0x20] sm:$0xf]  ;;  %v2469_v57 = vld [vmem:[#allocation7 + $0x24] sm:$0xf0]  ;;  %v2468_v59 = vld [vmem:[#allocation7 + $0x24] sm:$0xf] }
  0x27   :  { %345 = vmatpush.bf16.msra.mxu2 %v1940_v25  ;;  %v1904_v58 = vor.u32 %v2469_v57, %v1903_v56  ;;  %v1905_v60 = vld [vmem:[#allocation7 + $0x28] sm:$0xf0]  ;;  %v1895_v61 = vld [vmem:[#allocation7 + $0x10] sm:$0xf]  ;;  %v2467_v0 = vld [vmem:[#allocation7 + $0x14] sm:$0xf0] }
  0x28   :  { %v1908_v63 = vor.u32 %v2468_v59, %v1905_v60  ;;  %v2466_v1 = vld [vmem:[#allocation7 + $0x14] sm:$0xf]  ;;  %v1896_v2 = vor.u32 %v2467_v0, %v1895_v61  ;;  %v2465_v8 = vld [vmem:[#allocation7 + $0x4] sm:$0xf0]  ;;  %v2464_v9 = vld [vmem:[#allocation7 + $0x4] sm:$0xf] }
  0x29   :  { %v1889_v10 = vld [vmem:[#allocation7 + $0x8] sm:$0xf0]  ;;  %v117_v18 = vld [vmem:[#allocation11] ss:$0 sm:$0xff]  ;;  %v2510_v60 = vld [vmem:[#allocation8 + $0xec] sm:$0xf0] }
  0x2a   :  { %332 = vmatpush.bf16.msra.mxu1 %v1928_v30  ;;  %v1892_v12 = vor.u32 %v2464_v9, %v1889_v10  ;;  %v2063_v59 = vld [vmem:[#allocation8 + $0xe0] sm:$0xf]  ;;  %v2065_v9 = vld [vmem:[#allocation8 + $0xf0] sm:$0xf0]  ;;  %v2540_v10 = vld [vmem:[#allocation8 + $0x1e4] sm:$0xf] }
  0x2b   :  { %346 = vmatpush.bf16.msra.mxu2 %v1932_v35  ;;  %v2191_v61 = vld [vmem:[#allocation8 + $0x1e0] sm:$0xf]  ;;  %s1854_s5 = sshll.u32 %s2833_s4, 4  ;;  %s1856_s7 = sshll.u32 %s3217_s6, 4  ;;  %s1855_s5 = int_to_ptr.vmem [resolvable:$true] %s1854_s5  ;;  %s1857_s7 = int_to_ptr.hbm [resolvable:$true] %s1856_s7 }
  0x2e   :  { %333 = vmatpush.bf16.msra.mxu1 %v1920_v40 }
  0x2f   :  { %347 = vmatpush.bf16.msra.mxu2 %v1924_v45 }
  0x32   :  { %334 = vmatpush.bf16.msra.mxu1 %v1912_v50 }
  0x33   :  { %348 = vmatpush.bf16.msra.mxu2 %v1916_v54 }
  0x36   :  { %335 = vmatpush.bf16.msra.mxu1 %v1904_v58 }
  0x37   :  { %349 = vmatpush.bf16.msra.mxu2 %v1908_v63 }
  0x3a   :  { %336 = vmatpush.bf16.msra.mxu1 %v1896_v2  ;;  %v2542_v2 = vld [vmem:[#allocation8 + $0x1ec] sm:$0xf0] }
  0xa3   :  { %v2890_v3 = vpop.f32.mrf.mxu0 }
  0xa4   :  { %v177_v5 = vmul.f32 %v2890_v3, %v2890_v3  ;;  %v205_v21 = vpack.c.bf16 %v2890_v3, %v2890_v3 }
  0xab   :  { %v2892_v4 = vpop.f32.mrf.mxu0 }
  0xac   :  { %v170_v6 = vadd.f32 %v2892_v4, %v2890_v3  ;;  %v178_v7 = vmul.f32 %v2892_v4, %v2892_v4 }
  0xae   :  { %v171_v13 = vrot.slane %v170_v6, 4  ;;  %v179_v14 = vadd.f32 %v178_v7, %v177_v5  ;;  %v1897_v5 = vld [vmem:[#allocation7 + $0x18] sm:$0xf0]  ;;  %v1887_v7 = vld [vmem:[#allocation7] sm:$0xf] }
  0xaf   :  { %v1888_v11 = vor.u32 %v2465_v8, %v1887_v7  ;;  %v2064_v7 = vor.u32 %v2510_v60, %v2063_v59  ;;  %v2192_v8 = vor.u32 %v2542_v2, %v2191_v61  ;;  %v2015_v60 = vld [vmem:[#allocation8 + $0x80] sm:$0xf]  ;;  %v2498_v61 = vld [vmem:[#allocation8 + $0x8c] sm:$0xf0] }
  0xb0   :  { %v172_v16 = vadd.f32 %v171_v13, %v170_v6  ;;  %v180_v17 = vrot.slane %v179_v14, 4  ;;  %v1900_v6 = vor.u32 %v2466_v1, %v1897_v5  ;;  %v2508_v5 = vld [vmem:[#allocation8 + $0xe4] sm:$0xf]  ;;  %v2530_v2 = vld [vmem:[#allocation8 + $0x18c] sm:$0xf0] }
  0xb1   :  { %337 = vmatpush.bf16.msra.mxu1 %v1888_v11  ;;  %v2193_v11 = vld [vmem:[#allocation8 + $0x1f0] sm:$0xf0]  ;;  %901 = vmatpush.bf16.msra.mxu3 %v2064_v7 }
  0xb2   :  { %v173_v23 = vrot.slane %v172_v16, 2  ;;  %v181_v24 = vadd.f32 %v180_v17, %v179_v14  ;;  %350 = vmatpush.bf16.msra.mxu2 %v1900_v6  ;;  %915 = vmatpush.bf16.msrb.mxu0 %v2192_v8 }
  0xb4   :  { %v174_v26 = vadd.f32 %v173_v23, %v172_v16  ;;  %v182_v27 = vrot.slane %v181_v24, 2  ;;  %v206_v23 = vpack.c.bf16 %v2892_v4, %v2892_v4 }
  0xb6   :  { %v175_v33 = vrot.slane %v174_v26, 1  ;;  %v183_v34 = vadd.f32 %v182_v27, %v181_v24  ;;  %351 = vmatpush.bf16.msra.mxu2 %v1892_v12  ;;  %v118_v24 = vld [vmem:[#allocation11 + $0x1] ss:$0 sm:$0xff]  ;;  %v208_v27 = vunpack.c.l.bf16 %v205_v21  ;;  %v209_v28 = vunpack.c.l.bf16 %v206_v23 }
  0xb7   :  { %v2196_v23 = vor.u32 %v2540_v10, %v2193_v11  ;;  %v2528_v10 = vld [vmem:[#allocation8 + $0x184] sm:$0xf]  ;;  %v2145_v11 = vld [vmem:[#allocation8 + $0x190] sm:$0xf0] }
  0xb8   :  { %v176_v36 = vadd.f32 %v175_v33, %v174_v26  ;;  %v184_v37 = vrot.slane %v183_v34, 1 }
  0xba   :  { %v185_v43 = vadd.f32 %v184_v37, %v183_v34  ;;  %v186_v44 = vmul.f32 0.0625, %v176_v36  ;;  %943 = vmatpush.bf16.msrb.mxu2 %v2196_v23 }
  0xbc   :  { %v187_v46 = vmul.f32 0.0625, %v185_v43  ;;  %v188_v47 = vmul.f32 %v186_v44, %v186_v44 }
  0xbe   :  { %v189_v53 = vsub.f32 %v187_v46, %v188_v47 }
  0xc0   :  { %v190_v55 = vmax.f32 %v189_v53, 0.0 }
  0xc2   :  { %v191_v62 = vadd.f32 1e-05, %v190_v55 }
  0xc4   :  { %2621 = vrsqrt.f32 %v191_v62  ;;  %vm198_vm2 = vweird.f32 %v191_v62 }
  0xca   :  { %v2622_v13 = vpop.eup %2621 }
  0xcb   :  { %v193_v14 = vmul.f32 %v2622_v13, %v191_v62  ;;  %vm199_vm1 = vweird.f32 %v2622_v13 }
  0xcc   :  { %vm200_vm3 = vmor %vm198_vm2, %vm199_vm1 }
  0xcd   :  { %v194_v15 = vmul.f32 %v2622_v13, %v193_v14 }
  0xcf   :  { %v195_v16 = vmul.f32 0.5, %v194_v15 }
  0xd1   :  { %v196_v17 = vsub.f32 1.5, %v195_v16  ;;  %v2068_v16 = vor.u32 %v2508_v5, %v2065_v9  ;;  %v2496_v5 = vld [vmem:[#allocation8 + $0x84] sm:$0xf] }
  0xd3   :  { %v197_v19 = vmul.f32 %v2622_v13, %v196_v17  ;;  %v2047_v17 = vld [vmem:[#allocation8 + $0xc0] sm:$0xf]  ;;  %929 = vmatpush.bf16.msrb.mxu1 %v2068_v16 }
  0xd4   :  { %v1999_v16 = vld [vmem:[#allocation8 + $0x60] sm:$0xf] }
  0xd5   :  { %v201_v20 = vsel %vm200_vm3, %v2622_v13, %v197_v19  ;;  %v2175_v19 = vld [vmem:[#allocation8 + $0x1c0] sm:$0xf] }
  0xd6   :  { %v202_v22 = vmul.f32 %v201_v20, %v117_v18  ;;  %v2506_v18 = vld [vmem:[#allocation8 + $0xcc] sm:$0xf0] }
  0xd8   :  { %v207_v25 = vpack.c.bf16 %v202_v22, %v202_v22  ;;  %v203_v26 = vmul.f32 %v202_v22, %v186_v44 }
  0xda   :  { %v210_v29 = vunpack.c.l.bf16 %v207_v25  ;;  %v204_v30 = vsub.f32 %v118_v24, %v203_v26  ;;  %v2538_v24 = vld [vmem:[#allocation8 + $0x1cc] sm:$0xf0]  ;;  %v2504_v25 = vld [vmem:[#allocation8 + $0xc4] sm:$0xf] }
  0xdc   :  { %v212_v31 = vmul.f32 %v210_v29, %v209_v28  ;;  %v211_v32 = vmul.f32 %v210_v29, %v208_v27  ;;  %v215_v33 = vpack.c.bf16 %v204_v30, %v204_v30  ;;  %v2048_v27 = vor.u32 %v2506_v18, %v2047_v17  ;;  %v2049_v29 = vld [vmem:[#allocation8 + $0xd0] sm:$0xf0]  ;;  %v2536_v30 = vld [vmem:[#allocation8 + $0x1c4] sm:$0xf]  ;;  %v2494_v17 = vld [vmem:[#allocation8 + $0x6c] sm:$0xf0] }
  0xdd   :  { %v2176_v28 = vor.u32 %v2538_v24, %v2175_v19 }
  0xde   :  { %v214_v34 = vpack.c.bf16 %v212_v31, %v212_v31  ;;  %v213_v35 = vpack.c.bf16 %v211_v32, %v211_v32  ;;  %v218_v38 = vunpack.c.l.bf16 %v215_v33  ;;  %902 = vmatpush.bf16.msra.mxu3 %v2048_v27 }
  0xdf   :  { %916 = vmatpush.bf16.msrb.mxu0 %v2176_v28  ;;  %v2524_v28 = vld [vmem:[#allocation8 + $0x164] sm:$0xf] }
  0xe0   :  { %v217_v36 = vunpack.c.l.bf16 %v214_v34  ;;  %v216_v37 = vunpack.c.l.bf16 %v213_v35  ;;  %v2052_v34 = vor.u32 %v2504_v25, %v2049_v29  ;;  %v2492_v25 = vld [vmem:[#allocation8 + $0x64] sm:$0xf]  ;;  %v2129_v29 = vld [vmem:[#allocation8 + $0x170] sm:$0xf0] }
  0xe2   :  { %v219_v3 = vadd.f32 %v218_v38, %v216_v37  ;;  %v220_v39 = vadd.f32 %v218_v38, %v217_v36  ;;  %v2177_v36 = vld [vmem:[#allocation8 + $0x1d0] sm:$0xf0]  ;;  %v2031_v37 = vld [vmem:[#allocation8 + $0xa0] sm:$0xf]  ;;  %v2502_v38 = vld [vmem:[#allocation8 + $0xac] sm:$0xf0]  ;;  %930 = vmatpush.bf16.msrb.mxu1 %v2052_v34 }
  0xe3   :  { %v2111_v34 = vld [vmem:[#allocation8 + $0x140] sm:$0xf] }
  0xe4   :  { %v221_v40 = vpack.c.bf16 %v219_v3, %v219_v3  ;;  %v222_v41 = vpack.c.bf16 %v220_v39, %v220_v39 }
  0xe6   :  { %v223_v4 = vunpack.c.l.bf16 %v221_v40  ;;  %v224_v42 = vunpack.c.l.bf16 %v222_v41  ;;  %v2180_v41 = vor.u32 %v2536_v30, %v2177_v36  ;;  %v2522_v36 = vld [vmem:[#allocation8 + $0x14c] sm:$0xf0] }
  0xe8   :  { %v225_v43 = vmul.f32 0.20019531, %v223_v4  ;;  %v226_v44 = vmul.f32 0.20019531, %v224_v42  ;;  %944 = vmatpush.bf16.msrb.mxu2 %v2180_v41 }
  0xea   :  { %v231_v45 = vmax.f32 %v223_v4, %v225_v43  ;;  %v232_v46 = vmax.f32 %v224_v42, %v226_v44  ;;  %v2159_v4 = vld [vmem:[#allocation8 + $0x1a0] sm:$0xf]  ;;  %v2534_v42 = vld [vmem:[#allocation8 + $0x1ac] sm:$0xf0]  ;;  %v2032_v44 = vor.u32 %v2502_v38, %v2031_v37  ;;  %v2488_v37 = vld [vmem:[#allocation8 + $0x44] sm:$0xf] }
  0xeb   :  { %v1985_v38 = vld [vmem:[#allocation8 + $0x50] sm:$0xf0] }
  0xec   :  { %v233_v47 = vpack.c.bf16 %v232_v46, %v231_v45  ;;  %v2160_v45 = vor.u32 %v2534_v42, %v2159_v4  ;;  %v2500_v46 = vld [vmem:[#allocation8 + $0xa4] sm:$0xf]  ;;  %903 = vmatpush.bf16.msra.mxu3 %v2032_v44  ;;  %v1988_v41 = vor.u32 %v2488_v37, %v1985_v38  ;;  %v2113_v42 = vld [vmem:[#allocation8 + $0x150] sm:$0xf0]  ;;  %v2183_v37 = vld [vmem:[#allocation8 + $0x1c8] sm:$0xf] }
  0xed   :  { %v2520_v4 = vld [vmem:[#allocation8 + $0x144] sm:$0xf]  ;;  %v2539_v38 = vld [vmem:[#allocation8 + $0x1d4] sm:$0xf0] }
  0xee   :  { %338 = vmatmul.bf16.vlgmr.msra.gmra.mxu1 %v233_v47  ;;  %352 = vmatmul.bf16.vlgmr.msra.gmra.mxu2 %v233_v47  ;;  %v2033_v47 = vld [vmem:[#allocation8 + $0xb0] sm:$0xf0] }
  0xef   :  { %917 = vmatpush.bf16.msrb.mxu0 %v2160_v45  ;;  %v1967_v45 = vld [vmem:[#allocation8 + $0x20] sm:$0xf] }
 0x16b   :  { %v2904_v48 = vpop.f32.mrf.mxu1 }
 0x16c   :  { %v372_v51 = vmul.f32 %v2904_v48, %v2904_v48 }
 0x171   :  { %v2906_v49 = vpop.f32.mrf.mxu2 }
 0x172   :  { %v373_v6 = vmul.f32 %v2906_v49, %v2906_v49 }
 0x173   :  { %v2908_v50 = vpop.f32.mrf.mxu1 }
 0x174   :  { %v358_v52 = vadd.f32 %v2908_v50, %v2904_v48  ;;  %v374_v53 = vmul.f32 %v2908_v50, %v2908_v50 }
 0x176   :  { %v359_v54 = vrot.slane %v358_v52, 4  ;;  %v376_v55 = vadd.f32 %v374_v53, %v372_v51 }
 0x178   :  { %v360_v56 = vadd.f32 %v359_v54, %v358_v52  ;;  %v377_v57 = vrot.slane %v376_v55, 4  ;;  %v2036_v54 = vor.u32 %v2500_v46, %v2033_v47  ;;  %v2486_v46 = vld [vmem:[#allocation8 + $0x2c] sm:$0xf0] }
 0x179   :  { %v2916_v58 = vpop.f32.mrf.mxu2 }
 0x17a   :  { %v361_v62 = vrot.slane %v360_v56, 2  ;;  %v378_v63 = vadd.f32 %v377_v57, %v376_v55  ;;  %v365_v0 = vadd.f32 %v2916_v58, %v2906_v49  ;;  %v375_v1 = vmul.f32 %v2916_v58, %v2916_v58  ;;  %v2532_v55 = vld [vmem:[#allocation8 + $0x1a4] sm:$0xf]  ;;  %931 = vmatpush.bf16.msrb.mxu1 %v2036_v54 }
 0x17b   :  { %v2484_v54 = vld [vmem:[#allocation8 + $0x24] sm:$0xf] }
 0x17c   :  { %v362_v12 = vadd.f32 %v361_v62, %v360_v56  ;;  %v379_v13 = vrot.slane %v378_v63, 2  ;;  %v366_v14 = vrot.slane %v365_v0, 4  ;;  %v383_v15 = vadd.f32 %v375_v1, %v373_v6  ;;  %v2161_v56 = vld [vmem:[#allocation8 + $0x1b0] sm:$0xf0]  ;;  %v2143_v62 = vld [vmem:[#allocation8 + $0x180] sm:$0xf] }
 0x17d   :  { %v2164_v59 = vor.u32 %v2532_v55, %v2161_v56  ;;  %v2016_v1 = vor.u32 %v2498_v61, %v2015_v60  ;;  %v2017_v6 = vld [vmem:[#allocation8 + $0x90] sm:$0xf0]  ;;  %v2144_v8 = vor.u32 %v2530_v2, %v2143_v62  ;;  %v2079_v2 = vld [vmem:[#allocation8 + $0x100] sm:$0xf] }
 0x17e   :  { %v363_v20 = vrot.slane %v362_v12, 1  ;;  %v380_v21 = vadd.f32 %v379_v13, %v378_v63  ;;  %v367_v22 = vadd.f32 %v366_v14, %v365_v0  ;;  %v384_v26 = vrot.slane %v383_v15, 4  ;;  %v1969_v56 = vld [vmem:[#allocation8 + $0x30] sm:$0xf0] }
 0x17f   :  { %v2020_v9 = vor.u32 %v2496_v5, %v2017_v6  ;;  %945 = vmatpush.bf16.msrb.mxu2 %v2164_v59  ;;  %v2148_v14 = vor.u32 %v2528_v10, %v2145_v11  ;;  %904 = vmatpush.bf16.msra.mxu3 %v2016_v1  ;;  %v2097_v59 = vld [vmem:[#allocation8 + $0x130] sm:$0xf0]  ;;  %v1972_v61 = vor.u32 %v2484_v54, %v1969_v56  ;;  %v2482_v1 = vld [vmem:[#allocation8 + $0xc] sm:$0xf0]  ;;  %v2503_v54 = vld [vmem:[#allocation8 + $0xb4] sm:$0xf0] }
 0x180   :  { %v364_v31 = vadd.f32 %v363_v20, %v362_v12  ;;  %v381_v32 = vrot.slane %v380_v21, 1  ;;  %v368_v33 = vrot.slane %v367_v22, 2  ;;  %v385_v35 = vadd.f32 %v384_v26, %v383_v15  ;;  %918 = vmatpush.bf16.msrb.mxu0 %v2144_v8  ;;  %v2001_v26 = vld [vmem:[#allocation8 + $0x70] sm:$0xf0]  ;;  %v2514_v6 = vld [vmem:[#allocation8 + $0x10c] sm:$0xf0] }
 0x181   :  { %v2000_v20 = vor.u32 %v2494_v17, %v1999_v16  ;;  %932 = vmatpush.bf16.msrb.mxu1 %v2020_v9  ;;  %v2004_v27 = vor.u32 %v2492_v25, %v2001_v26  ;;  %v1953_v8 = vld [vmem:[#allocation8 + $0x10] sm:$0xf0]  ;;  %v2080_v10 = vor.u32 %v2514_v6, %v2079_v2  ;;  %v2071_v16 = vld [vmem:[#allocation8 + $0xe8] sm:$0xf]  ;;  %v2511_v17 = vld [vmem:[#allocation8 + $0xf4] sm:$0xf0] }
 0x182   :  { %v382_v3 = vadd.f32 %v381_v32, %v380_v21  ;;  %v2924_v39 = vmul.f32 0.0625, %v364_v31  ;;  %v369_v40 = vadd.f32 %v368_v33, %v367_v22  ;;  %v386_v43 = vrot.slane %v385_v35, 2  ;;  %v2127_v21 = vld [vmem:[#allocation8 + $0x160] sm:$0xf]  ;;  %v2526_v22 = vld [vmem:[#allocation8 + $0x16c] sm:$0xf0] }
 0x183   :  { %v2128_v24 = vor.u32 %v2526_v22, %v2127_v21  ;;  %946 = vmatpush.bf16.msrb.mxu2 %v2148_v14  ;;  %905 = vmatpush.bf16.msra.mxu3 %v2000_v20  ;;  %v2132_v31 = vor.u32 %v2524_v28, %v2129_v29  ;;  %v1983_v32 = vld [vmem:[#allocation8 + $0x40] sm:$0xf]  ;;  %v2490_v33 = vld [vmem:[#allocation8 + $0x4c] sm:$0xf0]  ;;  %v2081_v14 = vld [vmem:[#allocation8 + $0x110] sm:$0xf0] }
 0x184   :  { %v392_v51 = vmul.f32 0.0625, %v382_v3  ;;  %v394_v52 = vmul.f32 %v2924_v39, %v2924_v39  ;;  %v370_v53 = vrot.slane %v369_v40, 1  ;;  %v387_v57 = vadd.f32 %v386_v43, %v385_v35  ;;  %v2945_v21 = vld [vmem:[#allocation11 + $0x2] ss:$8 sm:$0x3] }
 0x185   :  { %919 = vmatpush.bf16.msrb.mxu0 %v2128_v24  ;;  %v1984_v35 = vor.u32 %v2490_v33, %v1983_v32  ;;  %933 = vmatpush.bf16.msrb.mxu1 %v2004_v27  ;;  %v2116_v43 = vor.u32 %v2520_v4, %v2113_v42  ;;  %v2543_v24 = vld [vmem:[#allocation8 + $0x1f4] sm:$0xf0]  ;;  %v2509_v25 = vld [vmem:[#allocation8 + $0xec] sm:$0xf]  ;;  %v2073_v28 = vld [vmem:[#allocation8 + $0xf8] sm:$0xf0] }
 0x186   :  { %v396_v63 = vsub.f32 %v392_v51, %v394_v52  ;;  %v371_v0 = vadd.f32 %v370_v53, %v369_v40  ;;  %v388_v7 = vrot.slane %v387_v57, 1  ;;  %v2112_v40 = vor.u32 %v2522_v36, %v2111_v34  ;;  %v2095_v52 = vld [vmem:[#allocation8 + $0x120] sm:$0xf]  ;;  %v2518_v53 = vld [vmem:[#allocation8 + $0x12c] sm:$0xf0] }
 0x187   :  { %947 = vmatpush.bf16.msrb.mxu2 %v2132_v31  ;;  %906 = vmatpush.bf16.msra.mxu3 %v1984_v35  ;;  %v1968_v51 = vor.u32 %v2486_v46, %v1967_v45  ;;  %v2096_v60 = vor.u32 %v2518_v53, %v2095_v52  ;;  %v2541_v29 = vld [vmem:[#allocation8 + $0x1ec] sm:$0xf]  ;;  %v2076_v31 = vor.u32 %v2509_v25, %v2073_v28  ;;  %v2055_v33 = vld [vmem:[#allocation8 + $0xc8] sm:$0xf]  ;;  %v2507_v34 = vld [vmem:[#allocation8 + $0xd4] sm:$0xf0] }
 0x188   :  { %v398_v12 = vmax.f32 %v396_v63, 0.0  ;;  %v2928_v13 = vmul.f32 0.0625, %v371_v0  ;;  %v389_v15 = vadd.f32 %v388_v7, %v387_v57  ;;  %v2516_v57 = vld [vmem:[#allocation8 + $0x124] sm:$0xf]  ;;  %v1951_v0 = vld [vmem:[#allocation8] sm:$0xf]  ;;  %v2056_v36 = vor.u32 %v2507_v34, %v2055_v33 }
 0x189   :  { %920 = vmatpush.bf16.msrb.mxu0 %v2112_v40  ;;  %934 = vmatpush.bf16.msrb.mxu1 %v1988_v41  ;;  %v2100_v62 = vor.u32 %v2516_v57, %v2097_v59  ;;  %v1952_v5 = vor.u32 %v2482_v1, %v1951_v0  ;;  %v2480_v7 = vld [vmem:[#allocation8 + $0x4] sm:$0xf]  ;;  %v2184_v41 = vor.u32 %v2539_v38, %v2183_v37  ;;  %v2057_v4 = vld [vmem:[#allocation8 + $0xd8] sm:$0xf0]  ;;  %v2537_v42 = vld [vmem:[#allocation8 + $0x1cc] sm:$0xf] }
 0x18a   :  { %v2930_v18 = vadd.f32 1e-05, %v398_v12  ;;  %v395_v19 = vmul.f32 %v2928_v13, %v2928_v13  ;;  %v393_v23 = vmul.f32 0.0625, %v389_v15  ;;  %v1956_v11 = vor.u32 %v2480_v7, %v1953_v8  ;;  %v2512_v12 = vld [vmem:[#allocation8 + $0x104] sm:$0xf] }
 0x18b   :  { %948 = vmatpush.bf16.msrb.mxu2 %v2116_v43  ;;  %907 = vmatpush.bf16.msra.mxu3 %v1968_v51  ;;  %v2084_v15 = vor.u32 %v2512_v12, %v2081_v14  ;;  %v2185_v43 = vld [vmem:[#allocation8 + $0x1d8] sm:$0xf0]  ;;  %v423_v46 = vperm.slane %v2945_v21, 0  ;;  %v2167_v56 = vld [vmem:[#allocation8 + $0x1a8] sm:$0xf] }
 0x18c   :  { %2623 = vrsqrt.f32 %v2930_v18  ;;  %v397_v30 = vsub.f32 %v393_v23, %v395_v19  ;;  %v2199_v19 = vld [vmem:[#allocation8 + $0x1e8] sm:$0xf]  ;;  %v2072_v23 = vor.u32 %v2511_v17, %v2071_v16  ;;  %vm408_vm5 = vweird.f32 %v2930_v18  ;;  %v2535_v57 = vld [vmem:[#allocation8 + $0x1b4] sm:$0xf0]  ;;  %v2501_v59 = vld [vmem:[#allocation8 + $0xac] sm:$0xf] }
 0x18d   :  { %921 = vmatpush.bf16.msrb.mxu0 %v2096_v60  ;;  %935 = vmatpush.bf16.msrb.mxu1 %v1972_v61  ;;  %v2200_v27 = vor.u32 %v2543_v24, %v2199_v19  ;;  %v2188_v53 = vor.u32 %v2537_v42, %v2185_v43  ;;  %v2041_v0 = vld [vmem:[#allocation8 + $0xb8] sm:$0xf0]  ;;  %v2533_v1 = vld [vmem:[#allocation8 + $0x1ac] sm:$0xf]  ;;  %v2023_v6 = vld [vmem:[#allocation8 + $0x88] sm:$0xf] }
 0x18e   :  { %v399_v3 = vmax.f32 %v397_v30, 0.0  ;;  %v2201_v30 = vld [vmem:[#allocation8 + $0x1f8] sm:$0xf0]  ;;  %v2044_v2 = vor.u32 %v2501_v59, %v2041_v0  ;;  %v2499_v7 = vld [vmem:[#allocation8 + $0x94] sm:$0xf0] }
 0x18f   :  { %949 = vmatpush.bf16.msrb.mxu2 %v2100_v62  ;;  %908 = vmatpush.bf16.msra.mxu3 %v1952_v5  ;;  %v2204_v32 = vor.u32 %v2541_v29, %v2201_v30  ;;  %v424_v62 = vperm.slane %v2945_v21, 1  ;;  %v2169_v5 = vld [vmem:[#allocation8 + $0x1b8] sm:$0xf0]  ;;  %v2497_v12 = vld [vmem:[#allocation8 + $0x8c] sm:$0xf]  ;;  %v2024_v14 = vor.u32 %v2499_v7, %v2023_v6 }
 0x190   :  { %v2935_v44 = vadd.f32 1e-05, %v399_v3  ;;  %v2505_v3 = vld [vmem:[#allocation8 + $0xcc] sm:$0xf]  ;;  %v2153_v17 = vld [vmem:[#allocation8 + $0x198] sm:$0xf0] }
 0x191   :  { %922 = vmatpush.bf16.msrb.mxu0 %v2080_v10  ;;  %936 = vmatpush.bf16.msrb.mxu1 %v1956_v11  ;;  %v2060_v52 = vor.u32 %v2505_v3, %v2057_v4  ;;  %v2151_v10 = vld [vmem:[#allocation8 + $0x188] sm:$0xf]  ;;  %v2531_v11 = vld [vmem:[#allocation8 + $0x194] sm:$0xf0]  ;;  %v2529_v16 = vld [vmem:[#allocation8 + $0x18c] sm:$0xf] }
 0x192   :  { %v2937_v47 = vpop.eup %2623  ;;  %2625 = vrsqrt.f32 %v2935_v44  ;;  %vm418_vm8 = vweird.f32 %v2935_v44  ;;  %v2152_v21 = vor.u32 %v2531_v11, %v2151_v10  ;;  %v2156_v24 = vor.u32 %v2529_v16, %v2153_v17  ;;  %v122_v25 = vld [vmem:[#allocation11 + $0x3] ss:$8 sm:$0x3]  ;;  %v2495_v29 = vld [vmem:[#allocation8 + $0x74] sm:$0xf0] }
 0x193   :  { %v403_v55 = vmul.f32 %v2937_v47, %v2930_v18  ;;  %vm409_vm4 = vweird.f32 %v2937_v47  ;;  %957 = vmatpush.bf16.msrb.mxu3 %v2072_v23  ;;  %950 = vmatpush.bf16.msrb.mxu2 %v2084_v15  ;;  %v2039_v18 = vld [vmem:[#allocation8 + $0xa8] sm:$0xf]  ;;  %v2025_v15 = vld [vmem:[#allocation8 + $0x98] sm:$0xf0]  ;;  %v2493_v33 = vld [vmem:[#allocation8 + $0x6c] sm:$0xf] }
 0x194   :  { %vm2956_vm7 = vmor %vm408_vm5, %vm409_vm4  ;;  %v2028_v23 = vor.u32 %v2497_v12, %v2025_v15  ;;  %v2007_v28 = vld [vmem:[#allocation8 + $0x68] sm:$0xf]  ;;  %v2009_v34 = vld [vmem:[#allocation8 + $0x78] sm:$0xf0] }
 0x195   :  { %v404_v63 = vmul.f32 %v2937_v47, %v403_v55  ;;  %971 = vmatpush.bf16.msra.mxu0 %v2200_v27  ;;  %985 = vmatpush.bf16.msra.mxu1 %v2076_v31  ;;  %v2040_v55 = vor.u32 %v2503_v54, %v2039_v18  ;;  %v2135_v30 = vld [vmem:[#allocation8 + $0x168] sm:$0xf]  ;;  %v2525_v3 = vld [vmem:[#allocation8 + $0x16c] sm:$0xf]  ;;  %v2491_v42 = vld [vmem:[#allocation8 + $0x54] sm:$0xf0] }
 0x196   :  { %v2119_v43 = vld [vmem:[#allocation8 + $0x148] sm:$0xf]  ;;  %v2489_v18 = vld [vmem:[#allocation8 + $0x4c] sm:$0xf]  ;;  %v1993_v54 = vld [vmem:[#allocation8 + $0x58] sm:$0xf0] }
 0x197   :  { %v405_v9 = vmul.f32 0.5, %v404_v63  ;;  %999 = vmatpush.bf16.msra.mxu2 %v2204_v32  ;;  %958 = vmatpush.bf16.msrb.mxu3 %v2056_v36  ;;  %v2168_v63 = vor.u32 %v2535_v57, %v2167_v56  ;;  %v2527_v32 = vld [vmem:[#allocation8 + $0x174] sm:$0xf0]  ;;  %v439_v56 = vpack.c.bf16 %v2916_v58, %v2908_v50  ;;  %v2521_v57 = vld [vmem:[#allocation8 + $0x14c] sm:$0xf] }
 0x198   :  { %v2943_v20 = vpop.eup %2625  ;;  %v2136_v38 = vor.u32 %v2527_v32, %v2135_v30  ;;  %v2121_v59 = vld [vmem:[#allocation8 + $0x158] sm:$0xf0]  ;;  %v2487_v0 = vld [vmem:[#allocation8 + $0x34] sm:$0xf0]  ;;  %v2485_v7 = vld [vmem:[#allocation8 + $0x2c] sm:$0xf] }
 0x199   :  { %v406_v22 = vsub.f32 1.5, %v405_v9  ;;  %v413_v26 = vmul.f32 %v2943_v20, %v2935_v44  ;;  %vm419_vm6 = vweird.f32 %v2943_v20  ;;  %972 = vmatpush.bf16.msra.mxu0 %v2184_v41  ;;  %986 = vmatpush.bf16.msra.mxu1 %v2060_v52  ;;  %v2172_v9 = vor.u32 %v2533_v1, %v2169_v5  ;;  %v2103_v1 = vld [vmem:[#allocation8 + $0x128] sm:$0xf]  ;;  %v1977_v50 = vld [vmem:[#allocation8 + $0x38] sm:$0xf0] }
 0x19a   :  { %vm2964_vm9 = vmor %vm418_vm8, %vm419_vm6  ;;  %v2012_v41 = vor.u32 %v2493_v33, %v2009_v34  ;;  %v2517_v11 = vld [vmem:[#allocation8 + $0x12c] sm:$0xf]  ;;  %v2105_v12 = vld [vmem:[#allocation8 + $0x138] sm:$0xf0]  ;;  %v457_v15 = vunpack.c.h.bf16 %v439_v56  ;;  %vm1168_vm8 = vcmask 1041408  }
 0x19b   :  { %v414_v35 = vmul.f32 %v2943_v20, %v413_v26  ;;  %v407_v40 = vmul.f32 %v2937_v47, %v406_v22  ;;  %1000 = vmatpush.bf16.msra.mxu2 %v2188_v53  ;;  %959 = vmatpush.bf16.msrb.mxu3 %v2040_v55  ;;  %v2523_v53 = vld [vmem:[#allocation8 + $0x154] sm:$0xf0]  ;;  %v2089_v32 = vld [vmem:[#allocation8 + $0x118] sm:$0xf0] }
 0x19d   :  { %v415_v51 = vmul.f32 0.5, %v414_v35  ;;  %v411_v44 = vsel %vm2956_vm7, %v2937_v47, %v407_v40  ;;  %973 = vmatpush.bf16.msra.mxu0 %v2168_v63  ;;  %987 = vmatpush.bf16.msra.mxu1 %v2044_v2  ;;  %v2980_v40 = vpack.c.bf16 %v2906_v49, %v2904_v48  ;;  %v2120_v48 = vor.u32 %v2523_v53, %v2119_v43 }
 0x19e   :  { %v427_v19 = vmul.f32 %v423_v46, %v411_v44  ;;  %v1996_v49 = vor.u32 %v2489_v18, %v1993_v54  ;;  %v2124_v63 = vor.u32 %v2521_v57, %v2121_v59  ;;  %v2519_v44 = vld [vmem:[#allocation8 + $0x134] sm:$0xf0]  ;;  %vm1166_vm7 = vcmask 1042434  }
 0x19f   :  { %v416_v60 = vsub.f32 1.5, %v415_v51  ;;  %1001 = vmatpush.bf16.msra.mxu2 %v2172_v9  ;;  %960 = vmatpush.bf16.msrb.mxu3 %v2024_v14  ;;  %v454_v2 = vunpack.c.l.bf16 %v2980_v40  ;;  %v455_v58 = vunpack.c.h.bf16 %v2980_v40  ;;  %v456_v14 = vunpack.c.l.bf16 %v439_v56 }
 0x1a0   :  { %v429_v31 = vmul.f32 %v427_v19, %v2924_v39  ;;  %v1991_v39 = vld [vmem:[#allocation8 + $0x48] sm:$0xf]  ;;  %v2104_v17 = vor.u32 %v2519_v44, %v2103_v1 }
 0x1a1   :  { %v417_v8 = vmul.f32 %v2943_v20, %v416_v60  ;;  %974 = vmatpush.bf16.msra.mxu0 %v2152_v21  ;;  %988 = vmatpush.bf16.msra.mxu1 %v2028_v23  ;;  %v1992_v52 = vor.u32 %v2491_v42, %v1991_v39  ;;  %v1975_v60 = vld [vmem:[#allocation8 + $0x28] sm:$0xf]  ;;  %v1980_v23 = vor.u32 %v2485_v7, %v1977_v50 }
 0x1a2   :  { %v1976_v10 = vor.u32 %v2487_v0, %v1975_v60 }
 0x1a3   :  { %v421_v47 = vsel %vm2964_vm9, %v2943_v20, %v417_v8  ;;  %v2008_v20 = vor.u32 %v2495_v29, %v2007_v28  ;;  %1002 = vmatpush.bf16.msra.mxu2 %v2156_v24  ;;  %v2108_v24 = vor.u32 %v2517_v11, %v2105_v12 }
 0x1a4   :  { %v428_v22 = vmul.f32 %v424_v62, %v421_v47  ;;  %v2483_v47 = vld [vmem:[#allocation8 + $0x14] sm:$0xf0] }
 0x1a5   :  { %961 = vmatpush.bf16.msrb.mxu3 %v2008_v20  ;;  %975 = vmatpush.bf16.msra.mxu0 %v2136_v38  ;;  %v2513_v20 = vld [vmem:[#allocation8 + $0x10c] sm:$0xf] }
 0x1a6   :  { %v430_v26 = vmul.f32 %v428_v22, %v2928_v13  ;;  %v440_v27 = vpack.c.bf16 %v428_v22, %v427_v19  ;;  %v2137_v13 = vld [vmem:[#allocation8 + $0x178] sm:$0xf0]  ;;  %989 = vmatpush.bf16.msra.mxu1 %v2012_v41  ;;  %v1959_v19 = vld [vmem:[#allocation8 + $0x8] sm:$0xf]  ;;  %v2092_v41 = vor.u32 %v2513_v20, %v2089_v32 }
 0x1a7   :  { %v2140_v4 = vor.u32 %v2525_v3, %v2137_v13  ;;  %v1960_v30 = vor.u32 %v2483_v47, %v1959_v19 }
 0x1a8   :  { %v433_v35 = vrot.slane %v430_v26, 7  ;;  %v442_v36 = vunpack.c.l.b16 %v440_v27  ;;  %v443_v37 = vunpack.c.h.b16 %v440_v27  ;;  %v2515_v26 = vld [vmem:[#allocation8 + $0x114] sm:$0xf0]  ;;  %v2481_v27 = vld [vmem:[#allocation8 + $0xc] sm:$0xf] }
 0x1a9   :  { %1003 = vmatpush.bf16.msra.mxu2 %v2140_v4  ;;  %962 = vmatpush.bf16.msrb.mxu3 %v1992_v52 }
 0x1aa   :  { %v435_v45 = vsel %vm434_vm10, %v429_v31, %v433_v35  ;;  %v444_v46 = vpack.c.b16 %v442_v36, %v442_v36  ;;  %v445_v51 = vpack.c.b16 %v443_v37, %v443_v37  ;;  %976 = vmatpush.bf16.msra.mxu0 %v2120_v48  ;;  %990 = vmatpush.bf16.msra.mxu1 %v1996_v49  ;;  %v1961_v31 = vld [vmem:[#allocation8 + $0x18] sm:$0xf0] }
 0x1ab   :  { %v437_v55 = vsub.f32 %v122_v25, %v435_v45  ;;  %v2087_v25 = vld [vmem:[#allocation8 + $0x108] sm:$0xf]  ;;  %v1964_v40 = vor.u32 %v2481_v27, %v1961_v31 }
 0x1ac   :  { %v447_v61 = vpack.i.b16 %v444_v46, %v444_v46  ;;  %v451_v62 = vpack.i.b16 %v445_v51, %v445_v51  ;;  %v2088_v3 = vor.u32 %v2515_v26, %v2087_v25 }
 0x1ad   :  { %v467_v5 = vperm.slane %v437_v55, 0  ;;  %v468_v6 = vperm.slane %v437_v55, 1  ;;  %1004 = vmatpush.bf16.msra.mxu2 %v2124_v63  ;;  %963 = vmatpush.bf16.msrb.mxu3 %v1976_v10 }
 0x1ae   :  { %v449_v8 = vperm.slane %v447_v61, 0  ;;  %v453_v9 = vperm.slane %v451_v62, 0  ;;  %977 = vmatpush.bf16.msra.mxu0 %v2104_v17  ;;  %991 = vmatpush.bf16.msra.mxu1 %v1980_v23 }
 0x1af   :  { %v471_v16 = vpack.c.bf16 %v468_v6, %v467_v5 }
 0x1b0   :  { %v458_v21 = vunpack.c.l.bf16 %v449_v8  ;;  %v459_v22 = vunpack.c.l.bf16 %v453_v9 }
 0x1b1   :  { %v473_v28 = vunpack.c.l.b16 %v471_v16  ;;  %v474_v29 = vunpack.c.h.b16 %v471_v16  ;;  %1005 = vmatpush.bf16.msra.mxu2 %v2108_v24  ;;  %964 = vmatpush.bf16.msrb.mxu3 %v1960_v30 }
 0x1b2   :  { %v460_v33 = vmul.f32 %v458_v21, %v454_v2  ;;  %v461_v34 = vmul.f32 %v459_v22, %v455_v58  ;;  %v462_v35 = vmul.f32 %v458_v21, %v456_v14  ;;  %v463_v36 = vmul.f32 %v459_v22, %v457_v15  ;;  %978 = vmatpush.bf16.msra.mxu0 %v2088_v3 }
 0x1b3   :  { %v475_v37 = vpack.c.b16 %v473_v28, %v473_v28  ;;  %v476_v38 = vpack.c.b16 %v474_v29, %v474_v29  ;;  %992 = vmatpush.bf16.msra.mxu1 %v1964_v40 }
 0x1b4   :  { %v464_v13 = vpack.c.bf16 %v461_v34, %v460_v33  ;;  %v465_v4 = vpack.c.bf16 %v463_v36, %v462_v35 }
 0x1b5   :  { %v478_v39 = vpack.i.b16 %v475_v37, %v475_v37  ;;  %v482_v42 = vpack.i.b16 %v476_v38, %v476_v38  ;;  %1006 = vmatpush.bf16.msra.mxu2 %v2092_v41 }
 0x1b6   :  { %v485_v46 = vunpack.c.l.bf16 %v464_v13  ;;  %v486_v51 = vunpack.c.h.bf16 %v464_v13  ;;  %v487_v52 = vunpack.c.l.bf16 %v465_v4  ;;  %v488_v53 = vunpack.c.h.bf16 %v465_v4 }
 0x1b7   :  { %v480_v43 = vperm.slane %v478_v39, 0  ;;  %v484_v45 = vperm.slane %v482_v42, 0 }
 0x1b9   :  { %v489_v18 = vunpack.c.l.bf16 %v480_v43  ;;  %v490_v54 = vunpack.c.l.bf16 %v484_v45 }
 0x1bb   :  { %v493_v55 = vadd.f32 %v489_v18, %v487_v52  ;;  %v494_v56 = vadd.f32 %v490_v54, %v488_v53  ;;  %v491_v48 = vadd.f32 %v489_v18, %v485_v46  ;;  %v492_v49 = vadd.f32 %v490_v54, %v486_v51 }
 0x1bd   :  { %v495_v57 = vpack.c.bf16 %v492_v49, %v491_v48  ;;  %v496_v59 = vpack.c.bf16 %v494_v56, %v493_v55 }
 0x1bf   :  { %v497_v60 = vunpack.c.l.bf16 %v495_v57  ;;  %v499_v61 = vunpack.c.l.bf16 %v496_v59  ;;  %v498_v62 = vunpack.c.h.bf16 %v495_v57  ;;  %v500_v63 = vunpack.c.h.bf16 %v496_v59 }
 0x1c1   :  { %v501_v0 = vmul.f32 0.20019531, %v497_v60  ;;  %v503_v1 = vmul.f32 0.20019531, %v499_v61  ;;  %v502_v44 = vmul.f32 0.20019531, %v498_v62  ;;  %v504_v2 = vmul.f32 0.20019531, %v500_v63 }
 0x1c3   :  { %v511_v5 = vmax.f32 %v497_v60, %v501_v0  ;;  %v513_v6 = vmax.f32 %v499_v61, %v503_v1  ;;  %v512_v7 = vmax.f32 %v498_v62, %v502_v44  ;;  %v514_v50 = vmax.f32 %v500_v63, %v504_v2 }
 0x1c5   :  { %v515_v58 = vpack.c.bf16 %v513_v6, %v511_v5  ;;  %v516_v8 = vpack.c.bf16 %v514_v50, %v512_v7 }
 0x1c7   :  { %909 = vmatmul.bf16.vlgmr.msra.gmra.mxu3 %v515_v58  ;;  %923 = vmatmul.bf16.vlgmr.msrb.gmra.mxu0 %v516_v8 }
 0x1c8   :  { %937 = vmatmul.bf16.vlgmr.msrb.gmra.mxu1 %v515_v58  ;;  %951 = vmatmul.bf16.vlgmr.msrb.gmra.mxu2 %v516_v8 }
 0x1d7   :  { %965 = vmatmul.bf16.vlgmr.msrb.gmra.mxu3 %v515_v58  ;;  %979 = vmatmul.bf16.vlgmr.msra.gmra.mxu0 %v516_v8 }
 0x1d8   :  { %993 = vmatmul.bf16.vlgmr.msra.gmra.mxu1 %v515_v58  ;;  %1007 = vmatmul.bf16.vlgmr.msra.gmra.mxu2 %v516_v8 }
 0x244   :  { %v924_v9 = vpop.f32.mrf.mxu0 }
 0x245   :  { %v938_v10 = vpop.f32.mrf.mxu1 }
 0x24a   :  { %v910_v11 = vpop.f32.mrf.mxu3 }
 0x24b   :  { %v952_v12 = vpop.f32.mrf.mxu2  ;;  %v2987_v16 = vadd.f32 %v924_v9, %v910_v11 }
 0x24c   :  { %v926_v14 = vpop.f32.mrf.mxu0  ;;  %v2989_v17 = vadd.f32 %v952_v12, %v938_v10 }
 0x24d   :  { %v940_v15 = vpop.f32.mrf.mxu1  ;;  %v1041_v23 = vmul.f32 %v2987_v16, %v2987_v16 }
 0x24e   :  { %v1042_v26 = vmul.f32 %v2989_v17, %v2989_v17 }
 0x252   :  { %v912_v19 = vpop.f32.mrf.mxu3 }
 0x253   :  { %v2991_v47 = vadd.f32 %v926_v14, %v912_v19  ;;  %v954_v21 = vpop.f32.mrf.mxu2 }
 0x254   :  { %v2993_v22 = vadd.f32 %v954_v21, %v940_v15  ;;  %v980_v32 = vpop.f32.mrf.mxu0  ;;  %v2263_v21 = vld [vmem:[#allocation10 + $0x70] sm:$0xf] }
 0x255   :  { %v1013_v24 = vadd.f32 %v2991_v47, %v2987_v16  ;;  %v1045_v25 = vmul.f32 %v2991_v47, %v2991_v47  ;;  %v994_v35 = vpop.f32.mrf.mxu1 }
 0x256   :  { %v1020_v27 = vadd.f32 %v2993_v22, %v2989_v17  ;;  %v1046_v28 = vmul.f32 %v2993_v22, %v2993_v22 }
 0x257   :  { %v1014_v29 = vrot.slane %v1013_v24, 4  ;;  %v1049_v30 = vadd.f32 %v1045_v25, %v1041_v23  ;;  %v2559_v23 = vld [vmem:[#allocation10 + $0x74] sm:$0xf0] }
 0x258   :  { %v1021_v31 = vrot.slane %v1020_v27, 4  ;;  %v1056_v20 = vadd.f32 %v1046_v28, %v1042_v26  ;;  %v2327_v28 = vld [vmem:[#allocation10 + $0xf0] sm:$0xf] }
 0x259   :  { %v1015_v33 = vadd.f32 %v1014_v29, %v1013_v24  ;;  %v1050_v34 = vrot.slane %v1049_v30, 4  ;;  %v2575_v29 = vld [vmem:[#allocation10 + $0xf4] sm:$0xf0] }
 0x25a   :  { %v1022_v36 = vadd.f32 %v1021_v31, %v1020_v27  ;;  %v1057_v37 = vrot.slane %v1056_v20, 4  ;;  %v966_v38 = vpop.f32.mrf.mxu3  ;;  %v2264_v27 = vor.u32 %v2559_v23, %v2263_v21 }
 0x25b   :  { %v1016_v3 = vrot.slane %v1015_v33, 2  ;;  %v1051_v13 = vadd.f32 %v1050_v34, %v1049_v30  ;;  %v1008_v40 = vpop.f32.mrf.mxu2  ;;  %v3007_v52 = vadd.f32 %v980_v32, %v966_v38  ;;  %v2391_v32 = vld [vmem:[#allocation10 + $0x170] sm:$0xf] }
 0x25c   :  { %v1023_v41 = vrot.slane %v1022_v36, 2  ;;  %v1058_v4 = vadd.f32 %v1057_v37, %v1056_v20  ;;  %v3009_v54 = vadd.f32 %v1008_v40, %v994_v35  ;;  %v982_v57 = vpop.f32.mrf.mxu0  ;;  %1718 = vmatpush.bf16.msra.mxu3 %v2264_v27  ;;  %v2455_v40 = vld [vmem:[#allocation10 + $0x1f0] sm:$0xf] }
 0x25d   :  { %v1017_v39 = vadd.f32 %v1016_v3, %v1015_v33  ;;  %v1052_v42 = vrot.slane %v1051_v13, 2  ;;  %v1043_v62 = vmul.f32 %v3007_v52, %v3007_v52  ;;  %v996_v63 = vpop.f32.mrf.mxu1  ;;  %v2591_v33 = vld [vmem:[#allocation10 + $0x174] sm:$0xf0] }
 0x25e   :  { %v1024_v43 = vadd.f32 %v1023_v41, %v1022_v36  ;;  %v1059_v45 = vrot.slane %v1058_v4, 2  ;;  %v1044_v5 = vmul.f32 %v3009_v54, %v3009_v54  ;;  %v2607_v41 = vld [vmem:[#allocation10 + $0x1f4] sm:$0xf0] }
 0x25f   :  { %v1018_v46 = vrot.slane %v1017_v39, 1  ;;  %v1053_v51 = vadd.f32 %v1052_v42, %v1051_v13  ;;  %v2328_v13 = vor.u32 %v2575_v29, %v2327_v28 }
 0x260   :  { %v1025_v53 = vrot.slane %v1024_v43, 1  ;;  %v1060_v18 = vadd.f32 %v1059_v45, %v1058_v4  ;;  %v2255_v4 = vld [vmem:[#allocation10 + $0x60] sm:$0xf]  ;;  %v2392_v45 = vor.u32 %v2591_v33, %v2391_v32 }
 0x261   :  { %v1019_v55 = vadd.f32 %v1018_v46, %v1017_v39  ;;  %v1054_v56 = vrot.slane %v1053_v51, 1  ;;  %v2557_v46 = vld [vmem:[#allocation10 + $0x64] sm:$0xf0]  ;;  %1732 = vmatpush.bf16.msrb.mxu0 %v2328_v13 }
 0x262   :  { %v1026_v48 = vadd.f32 %v1025_v53, %v1024_v43  ;;  %v1061_v49 = vrot.slane %v1060_v18, 1  ;;  %v968_v59 = vpop.f32.mrf.mxu3  ;;  %1746 = vmatpush.bf16.msrb.mxu1 %v2392_v45 }
 0x263   :  { %v1055_v60 = vadd.f32 %v1054_v56, %v1053_v51  ;;  %v3011_v61 = vmul.f32 0.0625, %v1019_v55  ;;  %v3015_v0 = vadd.f32 %v982_v57, %v968_v59  ;;  %v1010_v1 = vpop.f32.mrf.mxu2  ;;  %v2573_v55 = vld [vmem:[#allocation10 + $0xe4] sm:$0xf0]  ;;  %v3041_v59 = vld [vmem:[#allocation11 + $0x4] ss:$8 sm:$0xf] }
 0x264   :  { %v1062_v44 = vadd.f32 %v1061_v49, %v1060_v18  ;;  %v3017_v2 = vmul.f32 0.0625, %v1026_v48  ;;  %v3021_v6 = vadd.f32 %v1010_v1, %v996_v63  ;;  %v2319_v18 = vld [vmem:[#allocation10 + $0xe0] sm:$0xf]  ;;  %v2589_v57 = vld [vmem:[#allocation10 + $0x164] sm:$0xf0]  ;;  %v1143_v33 = vperm.slane %v3041_v59, 1 }
 0x265   :  { %v1081_v7 = vmul.f32 0.0625, %v1055_v60  ;;  %v1085_v50 = vmul.f32 %v3011_v61, %v3011_v61  ;;  %v1027_v58 = vadd.f32 %v3015_v0, %v3007_v52  ;;  %v1047_v8 = vmul.f32 %v3015_v0, %v3015_v0  ;;  %v2383_v49 = vld [vmem:[#allocation10 + $0x160] sm:$0xf] }
 0x266   :  { %v1082_v9 = vmul.f32 0.0625, %v1062_v44  ;;  %v1086_v10 = vmul.f32 %v3017_v2, %v3017_v2  ;;  %v1034_v11 = vadd.f32 %v3021_v6, %v3009_v54  ;;  %v1048_v12 = vmul.f32 %v3021_v6, %v3021_v6  ;;  %v2447_v63 = vld [vmem:[#allocation10 + $0x1e0] sm:$0xf] }
 0x267   :  { %v1089_v14 = vsub.f32 %v1081_v7, %v1085_v50  ;;  %v1028_v15 = vrot.slane %v1027_v58, 4  ;;  %v1063_v19 = vadd.f32 %v1047_v8, %v1043_v62  ;;  %v2256_v7 = vor.u32 %v2557_v46, %v2255_v4  ;;  %v2605_v50 = vld [vmem:[#allocation10 + $0x1e4] sm:$0xf0]  ;;  %v2303_v46 = vld [vmem:[#allocation10 + $0xc0] sm:$0xf] }
 0x268   :  { %v1090_v24 = vsub.f32 %v1082_v9, %v1086_v10  ;;  %v1035_v25 = vrot.slane %v1034_v11, 4  ;;  %v1070_v26 = vadd.f32 %v1048_v12, %v1044_v5  ;;  %v2456_v5 = vor.u32 %v2607_v41, %v2455_v40  ;;  %v2555_v12 = vld [vmem:[#allocation10 + $0x54] sm:$0xf0]  ;;  %v2239_v41 = vld [vmem:[#allocation10 + $0x40] sm:$0xf] }
 0x269   :  { %v1093_v30 = vmax.f32 %v1089_v14, 0.0  ;;  %v1029_v31 = vadd.f32 %v1028_v15, %v1027_v58  ;;  %v1064_v20 = vrot.slane %v1063_v19, 4  ;;  %v2247_v58 = vld [vmem:[#allocation10 + $0x50] sm:$0xf]  ;;  %v2320_v10 = vor.u32 %v2573_v55, %v2319_v18  ;;  %1719 = vmatpush.bf16.msra.mxu3 %v2256_v7  ;;  %v2553_v4 = vld [vmem:[#allocation10 + $0x44] sm:$0xf0] }
 0x26a   :  { %v1094_v34 = vmax.f32 %v1090_v24, 0.0  ;;  %v1036_v35 = vadd.f32 %v1035_v25, %v1034_v11  ;;  %v1071_v36 = vrot.slane %v1070_v26, 4  ;;  %v2384_v11 = vor.u32 %v2589_v57, %v2383_v49  ;;  %v2311_v14 = vld [vmem:[#allocation10 + $0xd0] sm:$0xf]  ;;  %1760 = vmatpush.bf16.msrb.mxu2 %v2456_v5  ;;  %v2571_v24 = vld [vmem:[#allocation10 + $0xd4] sm:$0xf0] }
 0x26b   :  { %v3035_v37 = vadd.f32 1e-05, %v1093_v30  ;;  %v1030_v38 = vrot.slane %v1029_v31, 2  ;;  %v1065_v3 = vadd.f32 %v1064_v20, %v1063_v19  ;;  %v2448_v21 = vor.u32 %v2605_v50, %v2447_v63  ;;  %1733 = vmatpush.bf16.msrb.mxu0 %v2320_v10  ;;  %v2375_v30 = vld [vmem:[#allocation10 + $0x150] sm:$0xf] }
 0x26c   :  { %v3037_v39 = vadd.f32 1e-05, %v1094_v34  ;;  %v1037_v42 = vrot.slane %v1036_v35, 2  ;;  %v1072_v43 = vadd.f32 %v1071_v36, %v1070_v26  ;;  %v2248_v23 = vor.u32 %v2555_v12, %v2247_v58  ;;  %1747 = vmatpush.bf16.msrb.mxu1 %v2384_v11  ;;  %v2439_v36 = vld [vmem:[#allocation10 + $0x1d0] sm:$0xf] }
 0x26d   :  { %2627 = vrsqrt.f32 %v3035_v37  ;;  %v1031_v51 = vadd.f32 %v1030_v38, %v1029_v31  ;;  %v1066_v53 = vrot.slane %v1065_v3, 2  ;;  %v1142_v26 = vperm.slane %v3041_v59, 0  ;;  %v2587_v31 = vld [vmem:[#allocation10 + $0x154] sm:$0xf0]  ;;  %v2431_v63 = vld [vmem:[#allocation10 + $0x1c0] sm:$0xf] }
 0x26e   :  { %2629 = vrsqrt.f32 %v3037_v39  ;;  %v1038_v56 = vadd.f32 %v1037_v42, %v1036_v35  ;;  %v1073_v48 = vrot.slane %v1072_v43, 2  ;;  %v2312_v29 = vor.u32 %v2571_v24, %v2311_v14  ;;  %v2603_v38 = vld [vmem:[#allocation10 + $0x1d4] sm:$0xf0]  ;;  %1761 = vmatpush.bf16.msrb.mxu2 %v2448_v21  ;;  %1720 = vmatpush.bf16.msra.mxu3 %v2248_v23  ;;  %v2231_v58 = vld [vmem:[#allocation10 + $0x30] sm:$0xf] }
 0x26f   :  { %v1032_v60 = vrot.slane %v1031_v51, 1  ;;  %v1067_v62 = vadd.f32 %v1066_v53, %v1065_v3  ;;  %vm1107_vm11 = vweird.f32 %v3035_v37  ;;  %v2376_v55 = vor.u32 %v2587_v31, %v2375_v30  ;;  %v2295_v14 = vld [vmem:[#allocation10 + $0xb0] sm:$0xf]  ;;  %v2583_v31 = vld [vmem:[#allocation10 + $0x134] sm:$0xf0] }
 0x270   :  { %v1039_v1 = vrot.slane %v1038_v56, 1  ;;  %v1074_v44 = vadd.f32 %v1073_v48, %v1072_v43  ;;  %1734 = vmatpush.bf16.msrb.mxu0 %v2312_v29  ;;  %v2585_v48 = vld [vmem:[#allocation10 + $0x144] sm:$0xf0]  ;;  %vm1117_vm15 = vweird.f32 %v3037_v39 }
 0x271   :  { %v1033_v8 = vadd.f32 %v1032_v60, %v1031_v51  ;;  %v1068_v9 = vrot.slane %v1067_v62, 1  ;;  %v2569_v51 = vld [vmem:[#allocation10 + $0xc4] sm:$0xf0]  ;;  %v2440_v60 = vor.u32 %v2603_v38, %v2439_v36  ;;  %1748 = vmatpush.bf16.msrb.mxu1 %v2376_v55  ;;  %v2599_v36 = vld [vmem:[#allocation10 + $0x1b4] sm:$0xf0] }
 0x272   :  { %v1040_v15 = vadd.f32 %v1039_v1, %v1038_v56  ;;  %v1075_v19 = vrot.slane %v1074_v44, 1  ;;  %v2367_v56 = vld [vmem:[#allocation10 + $0x140] sm:$0xf]  ;;  %v2601_v1 = vld [vmem:[#allocation10 + $0x1c4] sm:$0xf0]  ;;  %v2304_v7 = vor.u32 %v2569_v51, %v2303_v46 }
 0x273   :  { %v3043_v25 = vpop.eup %2627  ;;  %v1069_v27 = vadd.f32 %v1068_v9, %v1067_v62  ;;  %v3046_v28 = vmul.f32 0.0625, %v1033_v8  ;;  %v2240_v62 = vor.u32 %v2553_v4, %v2239_v41  ;;  %v2368_v50 = vor.u32 %v2585_v48, %v2367_v56  ;;  %v2551_v8 = vld [vmem:[#allocation10 + $0x34] sm:$0xf0]  ;;  %1762 = vmatpush.bf16.msrb.mxu2 %v2440_v60  ;;  %v2223_v38 = vld [vmem:[#allocation10 + $0x20] sm:$0xf] }
 0x274   :  { %v3048_v20 = vpop.eup %2629  ;;  %v1102_v32 = vmul.f32 %v3043_v25, %v3035_v37  ;;  %v1076_v34 = vadd.f32 %v1075_v19, %v1074_v44  ;;  %v3053_v35 = vmul.f32 0.0625, %v1040_v15  ;;  %vm1108_vm12 = vweird.f32 %v3043_v25  ;;  %v2567_v15 = vld [vmem:[#allocation10 + $0xb4] sm:$0xf0]  ;;  %1735 = vmatpush.bf16.msrb.mxu0 %v2304_v7  ;;  %v2287_v41 = vld [vmem:[#allocation10 + $0xa0] sm:$0xf] }
 0x275   :  { %v1112_v3 = vmul.f32 %v3048_v20, %v3037_v39  ;;  %v1083_v13 = vmul.f32 0.0625, %v1069_v27  ;;  %v1087_v40 = vmul.f32 %v3046_v28, %v3046_v28  ;;  %vm1118_vm13 = vweird.f32 %v3048_v20  ;;  %1721 = vmatpush.bf16.msra.mxu3 %v2240_v62  ;;  %vm3070_vm14 = vmor %vm1107_vm11, %vm1108_vm12  ;;  %v2359_v27 = vld [vmem:[#allocation10 + $0x130] sm:$0xf]  ;;  %1749 = vmatpush.bf16.msrb.mxu1 %v2368_v50  ;;  %v2565_v4 = vld [vmem:[#allocation10 + $0xa4] sm:$0xf0] }
 0x276   :  { %v1103_v42 = vmul.f32 %v3043_v25, %v1102_v32  ;;  %v1084_v43 = vmul.f32 0.0625, %v1076_v34  ;;  %v1088_v45 = vmul.f32 %v3053_v35, %v3053_v35  ;;  %v2432_v11 = vor.u32 %v2601_v1, %v2431_v63  ;;  %vm3080_vm0 = vmor %vm1117_vm15, %vm1118_vm13  ;;  %v2423_v32 = vld [vmem:[#allocation10 + $0x1b0] sm:$0xf]  ;;  %v2547_v48 = vld [vmem:[#allocation10 + $0x14] sm:$0xf0] }
 0x277   :  { %v1113_v53 = vmul.f32 %v3048_v20, %v1112_v3  ;;  %v1091_v18 = vsub.f32 %v1083_v13, %v1087_v40  ;;  %v2232_v12 = vor.u32 %v2551_v8, %v2231_v58  ;;  %v2296_v24 = vor.u32 %v2567_v15, %v2295_v14  ;;  %v2549_v3 = vld [vmem:[#allocation10 + $0x24] sm:$0xf0]  ;;  %v2215_v56 = vld [vmem:[#allocation10 + $0x10] sm:$0xf]  ;;  %v2579_v63 = vld [vmem:[#allocation10 + $0x114] sm:$0xf0] }
 0x278   :  { %v1104_v49 = vmul.f32 0.5, %v1103_v42  ;;  %v1092_v57 = vsub.f32 %v1084_v43, %v1088_v45  ;;  %v2360_v39 = vor.u32 %v2583_v31, %v2359_v27  ;;  %1763 = vmatpush.bf16.msrb.mxu2 %v2432_v11  ;;  %v2424_v40 = vor.u32 %v2599_v36, %v2423_v32  ;;  %v2351_v42 = vld [vmem:[#allocation10 + $0x120] sm:$0xf]  ;;  %v2343_v62 = vld [vmem:[#allocation10 + $0x110] sm:$0xf] }
 0x279   :  { %v1114_v44 = vmul.f32 0.5, %v1113_v53  ;;  %v1095_v5 = vmax.f32 %v1091_v18, 0.0  ;;  %1722 = vmatpush.bf16.msra.mxu3 %v2232_v12  ;;  %1736 = vmatpush.bf16.msrb.mxu0 %v2296_v24  ;;  %v2224_v46 = vor.u32 %v2549_v3, %v2223_v38  ;;  %v2288_v51 = vor.u32 %v2565_v4, %v2287_v41  ;;  %v2415_v53 = vld [vmem:[#allocation10 + $0x1a0] sm:$0xf]  ;;  %v2597_v18 = vld [vmem:[#allocation10 + $0x1a4] sm:$0xf0] }
 0x27a   :  { %v1105_v9 = vsub.f32 1.5, %v1104_v49  ;;  %v1096_v10 = vmax.f32 %v1092_v57, 0.0  ;;  %v2279_v49 = vld [vmem:[#allocation10 + $0x90] sm:$0xf]  ;;  %1750 = vmatpush.bf16.msrb.mxu1 %v2360_v39  ;;  %v2563_v57 = vld [vmem:[#allocation10 + $0x94] sm:$0xf0]  ;;  %v3113_v14 = vpack.c.bf16 %v2989_v17, %v2987_v16 }
 0x27b   :  { %v1115_v21 = vsub.f32 1.5, %v1114_v44  ;;  %v3075_v23 = vadd.f32 1e-05, %v1095_v5  ;;  %v2216_v44 = vor.u32 %v2547_v48, %v2215_v56  ;;  %v2407_v5 = vld [vmem:[#allocation10 + $0x190] sm:$0xf]  ;;  %v1144_v15 = vperm.slane %v3041_v59, 2 }
 0x27c   :  { %v1106_v29 = vmul.f32 %v3043_v25, %v1105_v9  ;;  %v3084_v37 = vadd.f32 1e-05, %v1096_v10  ;;  %1764 = vmatpush.bf16.msrb.mxu2 %v2424_v40  ;;  %v2595_v7 = vld [vmem:[#allocation10 + $0x194] sm:$0xf0]  ;;  %v2207_v50 = vld [vmem:[#allocation10] sm:$0xf] }
 0x27d   :  { %v1116_v34 = vmul.f32 %v3048_v20, %v1115_v21  ;;  %2631 = vrsqrt.f32 %v3075_v23  ;;  %1723 = vmatpush.bf16.msra.mxu3 %v2224_v46  ;;  %1737 = vmatpush.bf16.msrb.mxu0 %v2288_v51  ;;  %v2545_v10 = vld [vmem:[#allocation10 + $0x4] sm:$0xf0]  ;;  %v2271_v11 = vld [vmem:[#allocation10 + $0x80] sm:$0xf]  ;;  %v2344_v21 = vor.u32 %v2579_v63, %v2343_v62  ;;  %v2408_v32 = vor.u32 %v2595_v7, %v2407_v5  ;;  %v2558_v17 = vld [vmem:[#allocation10 + $0x74] sm:$0xf] }
 0x27e   :  { %v1110_v13 = vsel %vm3070_vm14, %v3043_v25, %v1106_v29  ;;  %2633 = vrsqrt.f32 %v3084_v37  ;;  %v2581_v25 = vld [vmem:[#allocation10 + $0x124] sm:$0xf0]  ;;  %v2335_v24 = vld [vmem:[#allocation10 + $0x100] sm:$0xf]  ;;  %v3120_v29 = vpack.c.bf16 %v2993_v22, %v2991_v47  ;;  %v2208_v36 = vor.u32 %v2545_v10, %v2207_v50  ;;  %v2329_v47 = vld [vmem:[#allocation10 + $0xf8] sm:$0xf0] }
 0x27f   :  { %v3094_v43 = vmul.f32 %v1142_v26, %v1110_v13  ;;  %v1120_v45 = vsel %vm3080_vm0, %v3048_v20, %v1116_v34  ;;  %v2352_v26 = vor.u32 %v2581_v25, %v2351_v42  ;;  %v2416_v20 = vor.u32 %v2597_v18, %v2415_v53  ;;  %v2561_v12 = vld [vmem:[#allocation10 + $0x84] sm:$0xf0]  ;;  %v2399_v16 = vld [vmem:[#allocation10 + $0x180] sm:$0xf]  ;;  %v2265_v34 = vld [vmem:[#allocation10 + $0x78] sm:$0xf0] }
 0x280   :  { %v3101_v55 = vmul.f32 %v1143_v33, %v1120_v45  ;;  %v2280_v33 = vor.u32 %v2563_v57, %v2279_v49  ;;  %v2577_v27 = vld [vmem:[#allocation10 + $0x104] sm:$0xf0]  ;;  %v2272_v38 = vor.u32 %v2561_v12, %v2271_v11  ;;  %v2574_v13 = vld [vmem:[#allocation10 + $0xf4] sm:$0xf]  ;;  %vm1127_vm2 = vweird.f32 %v3075_v23  ;;  %v2393_v4 = vld [vmem:[#allocation10 + $0x178] sm:$0xf0] }
 0x281   :  { %1751 = vmatpush.bf16.msrb.mxu1 %v2352_v26  ;;  %1765 = vmatpush.bf16.msrb.mxu2 %v2416_v20  ;;  %v2593_v3 = vld [vmem:[#allocation10 + $0x184] sm:$0xf0]  ;;  %v2590_v41 = vld [vmem:[#allocation10 + $0x174] sm:$0xf]  ;;  %v2336_v45 = vor.u32 %v2577_v27, %v2335_v24  ;;  %v2268_v46 = vor.u32 %v2558_v17, %v2265_v34  ;;  %v2332_v51 = vor.u32 %v2574_v13, %v2329_v47  ;;  %v2457_v53 = vld [vmem:[#allocation10 + $0x1f8] sm:$0xf0]  ;;  %vm1137_vm5 = vweird.f32 %v3084_v37 }
 0x282   :  { %v1176_v60 = vpack.c.bf16 %v3101_v55, %v3094_v43  ;;  %1724 = vmatpush.bf16.msra.mxu3 %v2216_v44  ;;  %1738 = vmatpush.bf16.msrb.mxu0 %v2280_v33  ;;  %v2606_v25 = vld [vmem:[#allocation10 + $0x1f4] sm:$0xf]  ;;  %v2556_v49 = vld [vmem:[#allocation10 + $0x64] sm:$0xf]  ;;  %v2396_v20 = vor.u32 %v2590_v41, %v2393_v4  ;;  %v2257_v63 = vld [vmem:[#allocation10 + $0x68] sm:$0xf0]  ;;  %v1205_v10 = vunpack.c.h.bf16 %v3113_v14  ;;  %v1155_v27 = vmul.f32 %v3101_v55, %v3017_v2 }
 0x283   :  { %v3105_v1 = vpop.eup %2631  ;;  %v2460_v62 = vor.u32 %v2606_v25, %v2457_v53  ;;  %v2572_v44 = vld [vmem:[#allocation10 + $0xe4] sm:$0xf]  ;;  %v2260_v5 = vor.u32 %v2556_v49, %v2257_v63  ;;  %v2321_v7 = vld [vmem:[#allocation10 + $0xe8] sm:$0xf0]  ;;  %v2554_v24 = vld [vmem:[#allocation10 + $0x54] sm:$0xf] }
 0x284   :  { %v3107_v58 = vpop.eup %2633  ;;  %v1180_v8 = vunpack.c.l.b16 %v1176_v60  ;;  %v1122_v9 = vmul.f32 %v3105_v1, %v3075_v23  ;;  %v1181_v30 = vunpack.c.h.b16 %v1176_v60  ;;  %vm1128_vm1 = vweird.f32 %v3105_v1  ;;  %v2588_v50 = vld [vmem:[#allocation10 + $0x164] sm:$0xf]  ;;  %v2570_v17 = vld [vmem:[#allocation10 + $0xd4] sm:$0xf]  ;;  %v2313_v34 = vld [vmem:[#allocation10 + $0xd8] sm:$0xf0] }
 0x285   :  { %v1132_v19 = vmul.f32 %v3107_v58, %v3084_v37  ;;  %vm1138_vm3 = vweird.f32 %v3107_v58  ;;  %1752 = vmatpush.bf16.msrb.mxu1 %v2344_v21  ;;  %vm3133_vm4 = vmor %vm1127_vm2, %vm1128_vm1  ;;  %1766 = vmatpush.bf16.msrb.mxu2 %v2408_v32  ;;  %v2400_v23 = vor.u32 %v2593_v3, %v2399_v16  ;;  %v1145_v60 = vperm.slane %v3041_v59, 3  ;;  %v2449_v21 = vld [vmem:[#allocation10 + $0x1e8] sm:$0xf0]  ;;  %v2249_v16 = vld [vmem:[#allocation10 + $0x58] sm:$0xf0] }
 0x286   :  { %v1123_v31 = vmul.f32 %v3105_v1, %v1122_v9  ;;  %v3125_v22 = vpack.c.b16 %v1180_v8, %v1180_v8  ;;  %v3129_v18 = vpack.c.b16 %v1181_v30, %v1181_v30  ;;  %vm3140_vm6 = vmor %vm1137_vm5, %vm1138_vm3  ;;  %1725 = vmatpush.bf16.msra.mxu3 %v2208_v36  ;;  %1739 = vmatpush.bf16.msrb.mxu0 %v2272_v38  ;;  %v2385_v8 = vld [vmem:[#allocation10 + $0x168] sm:$0xf0]  ;;  %v1204_v9 = vunpack.c.l.bf16 %v3113_v14  ;;  %v2602_v38 = vld [vmem:[#allocation10 + $0x1d4] sm:$0xf] }
 0x287   :  { %v1133_v39 = vmul.f32 %v3107_v58, %v1132_v19  ;;  %v2324_v12 = vor.u32 %v2572_v44, %v2321_v7  ;;  %v2604_v19 = vld [vmem:[#allocation10 + $0x1e4] sm:$0xf]  ;;  %v2388_v32 = vor.u32 %v2588_v50, %v2385_v8  ;;  %v2252_v41 = vor.u32 %v2554_v24, %v2249_v16  ;;  %v2433_v49 = vld [vmem:[#allocation10 + $0x1c8] sm:$0xf0]  ;;  %v2550_v50 = vld [vmem:[#allocation10 + $0x34] sm:$0xf] }
 0x288   :  { %v1124_v40 = vmul.f32 0.5, %v1123_v31  ;;  %v1189_v37 = vpack.i.b16 %v3125_v22, %v3125_v22  ;;  %v1193_v30 = vpack.i.b16 %v3129_v18, %v3129_v18  ;;  %v3157_v31 = vpack.c.bf16 %v3009_v54, %v3007_v52  ;;  %v2586_v52 = vld [vmem:[#allocation10 + $0x154] sm:$0xf]  ;;  %v2377_v54 = vld [vmem:[#allocation10 + $0x158] sm:$0xf0] }
 0x289   :  { %v1134_v42 = vmul.f32 0.5, %v1133_v39  ;;  %1753 = vmatpush.bf16.msrb.mxu1 %v2336_v45  ;;  %1767 = vmatpush.bf16.msrb.mxu2 %v2400_v23  ;;  %v1208_v39 = vunpack.c.l.bf16 %v3120_v29  ;;  %v2452_v55 = vor.u32 %v2604_v19, %v2449_v21  ;;  %v2441_v22 = vld [vmem:[#allocation10 + $0x1d8] sm:$0xf0]  ;;  %v2316_v4 = vor.u32 %v2570_v17, %v2313_v34  ;;  %v2568_v45 = vld [vmem:[#allocation10 + $0xc4] sm:$0xf] }
 0x28a   :  { %v1125_v56 = vsub.f32 1.5, %v1124_v40  ;;  %1774 = vmatpush.bf16.msrb.mxu3 %v2268_v46  ;;  %1788 = vmatpush.bf16.msra.mxu0 %v2332_v51  ;;  %v3166_v3 = vperm.slane %v1189_v37, 0  ;;  %v1209_v40 = vunpack.c.h.bf16 %v3120_v29  ;;  %v2305_v46 = vld [vmem:[#allocation10 + $0xc8] sm:$0xf0]  ;;  %v1162_v51 = vrot.slane %v1155_v27, 7 }
 0x28b   :  { %v1135_v26 = vsub.f32 1.5, %v1134_v42  ;;  %v2241_v42 = vld [vmem:[#allocation10 + $0x48] sm:$0xf0]  ;;  %v1195_v59 = vperm.slane %v1193_v30, 0  ;;  %v2444_v25 = vor.u32 %v2602_v38, %v2441_v22  ;;  %v2584_v53 = vld [vmem:[#allocation10 + $0x144] sm:$0xf]  ;;  %v1206_v18 = vunpack.c.l.bf16 %v3157_v31 }
 0x28c   :  { %v1126_v33 = vmul.f32 %v3105_v1, %v1125_v56  ;;  %v1212_v57 = vunpack.c.l.bf16 %v3166_v3  ;;  %v126_v63 = vld [vmem:[#allocation11 + $0x5] ss:$8 sm:$0xf] }
 0x28d   :  { %v1136_v11 = vmul.f32 %v3107_v58, %v1135_v26  ;;  %1802 = vmatpush.bf16.msra.mxu1 %v2396_v20  ;;  %1816 = vmatpush.bf16.msra.mxu2 %v2460_v62  ;;  %v1154_v26 = vmul.f32 %v3094_v43, %v3011_v61  ;;  %v2308_v20 = vor.u32 %v2568_v45, %v2305_v46  ;;  %v2233_v8 = vld [vmem:[#allocation10 + $0x38] sm:$0xf0]  ;;  %v2582_v24 = vld [vmem:[#allocation10 + $0x134] sm:$0xf]  ;;  %v2548_v38 = vld [vmem:[#allocation10 + $0x24] sm:$0xf] }
 0x28e   :  { %v1130_v36 = vsel %vm3133_vm4, %v3105_v1, %v1126_v33  ;;  %1775 = vmatpush.bf16.msrb.mxu3 %v2260_v5  ;;  %v2552_v1 = vld [vmem:[#allocation10 + $0x44] sm:$0xf]  ;;  %1789 = vmatpush.bf16.msra.mxu0 %v2324_v12  ;;  %v1213_v33 = vunpack.c.l.bf16 %v1195_v59  ;;  %v2297_v21 = vld [vmem:[#allocation10 + $0xb8] sm:$0xf0]  ;;  %v1216_v30 = vmul.f32 %v1212_v57, %v1204_v9  ;;  %v2236_v17 = vor.u32 %v2550_v50, %v2233_v8  ;;  %v2598_v34 = vld [vmem:[#allocation10 + $0x1b4] sm:$0xf] }
 0x28f   :  { %v1140_v2 = vsel %vm3140_vm6, %v3107_v58, %v1136_v11  ;;  %v1152_v13 = vmul.f32 %v1144_v15, %v1130_v36  ;;  %v3173_v58 = vpack.c.bf16 %v3021_v6, %v3015_v0  ;;  %v2380_v15 = vor.u32 %v2586_v52, %v2377_v54  ;;  %v2369_v0 = vld [vmem:[#allocation10 + $0x148] sm:$0xf0]  ;;  %v2600_v6 = vld [vmem:[#allocation10 + $0x1c4] sm:$0xf]  ;;  %v2566_v11 = vld [vmem:[#allocation10 + $0xb4] sm:$0xf] }
 0x290   :  { %v1153_v47 = vmul.f32 %v1145_v60, %v1140_v2  ;;  %v2244_v60 = vor.u32 %v2552_v1, %v2241_v42  ;;  %v2372_v5 = vor.u32 %v2584_v53, %v2369_v0  ;;  %v2436_v7 = vor.u32 %v2600_v6, %v2433_v49  ;;  %v2361_v27 = vld [vmem:[#allocation10 + $0x138] sm:$0xf0]  ;;  %v2225_v3 = vld [vmem:[#allocation10 + $0x28] sm:$0xf0]  ;;  %v2564_v1 = vld [vmem:[#allocation10 + $0xa4] sm:$0xf] }
 0x291   :  { %v1156_v56 = vmul.f32 %v1152_v13, %v3046_v28  ;;  %1803 = vmatpush.bf16.msra.mxu1 %v2388_v32  ;;  %1817 = vmatpush.bf16.msra.mxu2 %v2452_v55  ;;  %v1210_v19 = vunpack.c.l.bf16 %v3173_v58  ;;  %v1211_v16 = vunpack.c.h.bf16 %v3173_v58  ;;  %v2300_v52 = vor.u32 %v2566_v11, %v2297_v21  ;;  %v2425_v54 = vld [vmem:[#allocation10 + $0x1b8] sm:$0xf0]  ;;  %v2289_v58 = vld [vmem:[#allocation10 + $0xa8] sm:$0xf0]  ;;  %v2594_v50 = vld [vmem:[#allocation10 + $0x194] sm:$0xf] }
 0x292   :  { %v1157_v48 = vmul.f32 %v1153_v47, %v3053_v35  ;;  %v1177_v23 = vpack.c.bf16 %v1153_v47, %v1152_v13  ;;  %1776 = vmatpush.bf16.msrb.mxu3 %v2252_v41  ;;  %1790 = vmatpush.bf16.msra.mxu0 %v2316_v4  ;;  %v1165_v35 = vsel %vm434_vm10, %v1154_v26, %v1162_v51  ;;  %v2580_v41 = vld [vmem:[#allocation10 + $0x124] sm:$0xf]  ;;  %v2353_v51 = vld [vmem:[#allocation10 + $0x128] sm:$0xf0]  ;;  %v1207_v6 = vunpack.c.h.bf16 %v3157_v31  ;;  %v2217_v26 = vld [vmem:[#allocation10 + $0x18] sm:$0xf0] }
 0x293   :  { %v1163_v62 = vrot.slane %v1156_v56, 6  ;;  %v1217_v13 = vmul.f32 %v1213_v33, %v1205_v10  ;;  %v1220_v9 = vmul.f32 %v1212_v57, %v1208_v39  ;;  %v1221_v47 = vmul.f32 %v1213_v33, %v1209_v40  ;;  %v2596_v39 = vld [vmem:[#allocation10 + $0x1a4] sm:$0xf]  ;;  %v2562_v57 = vld [vmem:[#allocation10 + $0x94] sm:$0xf] }
 0x294   :  { %v1164_v44 = vrot.slane %v1157_v48, 5  ;;  %v1182_v28 = vunpack.c.l.b16 %v1177_v23  ;;  %v1183_v37 = vunpack.c.h.b16 %v1177_v23  ;;  %v2364_v22 = vor.u32 %v2582_v24, %v2361_v27  ;;  %v2546_v48 = vld [vmem:[#allocation10 + $0x14] sm:$0xf]  ;;  %v2409_v8 = vld [vmem:[#allocation10 + $0x198] sm:$0xf0] }
 0x295   :  { %1804 = vmatpush.bf16.msra.mxu1 %v2380_v15  ;;  %1818 = vmatpush.bf16.msra.mxu2 %v2444_v25  ;;  %v2428_v10 = vor.u32 %v2598_v34, %v2425_v54  ;;  %v2228_v15 = vor.u32 %v2548_v38, %v2225_v3  ;;  %v2417_v25 = vld [vmem:[#allocation10 + $0x1a8] sm:$0xf0]  ;;  %v2292_v56 = vor.u32 %v2564_v1, %v2289_v58  ;;  %v2576_v31 = vld [vmem:[#allocation10 + $0x104] sm:$0xf] }
 0x296   :  { %v1167_v61 = vsel %vm1166_vm7, %v1163_v62, %v1164_v44  ;;  %v1186_v43 = vpack.c.b16 %v1182_v28, %v1182_v28  ;;  %v1187_v12 = vpack.c.b16 %v1183_v37, %v1183_v37  ;;  %1777 = vmatpush.bf16.msrb.mxu3 %v2244_v60  ;;  %1791 = vmatpush.bf16.msra.mxu0 %v2308_v20  ;;  %v2281_v60 = vld [vmem:[#allocation10 + $0x98] sm:$0xf0]  ;;  %v2578_v28 = vld [vmem:[#allocation10 + $0x114] sm:$0xf]  ;;  %v2337_v3 = vld [vmem:[#allocation10 + $0x108] sm:$0xf0] }
 0x297   :  { %v1169_v32 = vsel %vm1168_vm8, %v1165_v35, %v1167_v61  ;;  %v3194_v23 = vpack.c.bf16 %v1217_v13, %v1216_v30  ;;  %v3196_v0 = vpack.c.bf16 %v1221_v47, %v1220_v9  ;;  %v2420_v44 = vor.u32 %v2596_v39, %v2417_v25  ;;  %v2592_v13 = vld [vmem:[#allocation10 + $0x184] sm:$0xf]  ;;  %v2401_v9 = vld [vmem:[#allocation10 + $0x188] sm:$0xf0] }
 0x298   :  { %v1171_v36 = vsub.f32 %v126_v63, %v1169_v32  ;;  %v1197_v2 = vpack.i.b16 %v1186_v43, %v1186_v43  ;;  %v1201_v55 = vpack.i.b16 %v1187_v12, %v1187_v12  ;;  %v2356_v63 = vor.u32 %v2580_v41, %v2353_v51  ;;  %v2209_v32 = vld [vmem:[#allocation10 + $0x8] sm:$0xf0] }
 0x299   :  { %1805 = vmatpush.bf16.msra.mxu1 %v2372_v5  ;;  %1819 = vmatpush.bf16.msra.mxu2 %v2436_v7  ;;  %v2345_v7 = vld [vmem:[#allocation10 + $0x118] sm:$0xf0]  ;;  %v2220_v43 = vor.u32 %v2546_v48, %v2217_v26  ;;  %v2284_v12 = vor.u32 %v2562_v57, %v2281_v60  ;;  %v1265_v34 = vunpack.c.l.bf16 %v3194_v23  ;;  %v1266_v47 = vunpack.c.h.bf16 %v3194_v23 }
 0x29a   :  { %v1199_v4 = vperm.slane %v1197_v2, 0  ;;  %v1203_v42 = vperm.slane %v1201_v55, 0  ;;  %v1231_v45 = vperm.slane %v1171_v36, 2  ;;  %v1232_v46 = vperm.slane %v1171_v36, 3  ;;  %1778 = vmatpush.bf16.msrb.mxu3 %v2236_v17  ;;  %1792 = vmatpush.bf16.msra.mxu0 %v2300_v52  ;;  %v2273_v17 = vld [vmem:[#allocation10 + $0x88] sm:$0xf0] }
 0x29b   :  { %v1229_v59 = vperm.slane %v1171_v36, 0  ;;  %v1230_v14 = vperm.slane %v1171_v36, 1  ;;  %v2348_v2 = vor.u32 %v2578_v28, %v2345_v7  ;;  %v2412_v55 = vor.u32 %v2594_v50, %v2409_v8 }
 0x29c   :  { %v1214_v29 = vunpack.c.l.bf16 %v1199_v4  ;;  %v1215_v40 = vunpack.c.l.bf16 %v1203_v42  ;;  %v1238_v53 = vpack.c.bf16 %v1232_v46, %v1231_v45 }
 0x29d   :  { %v1237_v49 = vpack.c.bf16 %v1230_v14, %v1229_v59  ;;  %1806 = vmatpush.bf16.msra.mxu1 %v2364_v22  ;;  %1820 = vmatpush.bf16.msra.mxu2 %v2428_v10  ;;  %v2340_v59 = vor.u32 %v2576_v31, %v2337_v3  ;;  %v2404_v14 = vor.u32 %v2592_v13, %v2401_v9 }
 0x29e   :  { %v1222_v20 = vmul.f32 %v1214_v29, %v1210_v19  ;;  %v1223_v62 = vmul.f32 %v1215_v40, %v1211_v16  ;;  %v1243_v37 = vunpack.c.l.b16 %v1238_v53  ;;  %v1244_v35 = vunpack.c.h.b16 %v1238_v53  ;;  %1779 = vmatpush.bf16.msrb.mxu3 %v2228_v15  ;;  %1793 = vmatpush.bf16.msra.mxu0 %v2292_v56  ;;  %v2544_v19 = vld [vmem:[#allocation10 + $0x4] sm:$0xf] }
 0x29f   :  { %v1241_v33 = vunpack.c.l.b16 %v1237_v49  ;;  %v1242_v5 = vunpack.c.h.b16 %v1237_v49  ;;  %v1218_v11 = vmul.f32 %v1214_v29, %v1206_v18  ;;  %v1219_v61 = vmul.f32 %v1215_v40, %v1207_v6  ;;  %v2560_v16 = vld [vmem:[#allocation10 + $0x84] sm:$0xf] }
 0x2a0   :  { %v1247_v21 = vpack.c.b16 %v1243_v37, %v1243_v37  ;;  %v1248_v24 = vpack.c.b16 %v1244_v35, %v1244_v35  ;;  %v1227_v36 = vpack.c.bf16 %v1223_v62, %v1222_v20  ;;  %v2212_v1 = vor.u32 %v2544_v19, %v2209_v32 }
 0x2a1   :  { %v1245_v27 = vpack.c.b16 %v1241_v33, %v1241_v33  ;;  %v1246_v30 = vpack.c.b16 %v1242_v5, %v1242_v5  ;;  %1807 = vmatpush.bf16.msra.mxu1 %v2356_v63  ;;  %1821 = vmatpush.bf16.msra.mxu2 %v2420_v44  ;;  %v1225_v22 = vpack.c.bf16 %v1219_v61, %v1218_v11  ;;  %v1269_v29 = vunpack.c.l.bf16 %v3196_v0 }
 0x2a2   :  { %v1258_v18 = vpack.i.b16 %v1247_v21, %v1247_v21  ;;  %v1262_v52 = vpack.i.b16 %v1248_v24, %v1248_v24  ;;  %1780 = vmatpush.bf16.msrb.mxu3 %v2220_v43  ;;  %1794 = vmatpush.bf16.msra.mxu0 %v2284_v12  ;;  %v2276_v58 = vor.u32 %v2560_v16, %v2273_v17  ;;  %v1271_v46 = vunpack.c.l.bf16 %v1227_v36 }
 0x2a3   :  { %v1250_v54 = vpack.i.b16 %v1245_v27, %v1245_v27  ;;  %v1254_v38 = vpack.i.b16 %v1246_v30, %v1246_v30  ;;  %v1272_v51 = vunpack.c.h.bf16 %v1227_v36  ;;  %v1270_v40 = vunpack.c.h.bf16 %v3196_v0 }
 0x2a4   :  { %v1260_v41 = vperm.slane %v1258_v18, 0  ;;  %v1264_v4 = vperm.slane %v1262_v52, 0  ;;  %v1267_v53 = vunpack.c.l.bf16 %v1225_v22  ;;  %v1268_v56 = vunpack.c.h.bf16 %v1225_v22 }
 0x2a5   :  { %v1252_v42 = vperm.slane %v1250_v54, 0  ;;  %v1256_v45 = vperm.slane %v1254_v38, 0  ;;  %1808 = vmatpush.bf16.msra.mxu1 %v2348_v2  ;;  %1822 = vmatpush.bf16.msra.mxu2 %v2412_v55  ;;  %v128_v38 = vld [vmem:[#allocation11 + $0x6] ss:$8 sm:$0x3] }
 0x2a6   :  { %v1275_v10 = vunpack.c.l.bf16 %v1260_v41  ;;  %v1276_v15 = vunpack.c.l.bf16 %v1264_v4  ;;  %1781 = vmatpush.bf16.msrb.mxu3 %v2212_v1  ;;  %1795 = vmatpush.bf16.msra.mxu0 %v2276_v58  ;;  %v1394_v13 = vperm.slane %v128_v38, 0 }
 0x2a7   :  { %v1273_v39 = vunpack.c.l.bf16 %v1252_v42  ;;  %v1274_v25 = vunpack.c.l.bf16 %v1256_v45 }
 0x2a8   :  { %v1283_v48 = vadd.f32 %v1275_v10, %v1271_v46  ;;  %v1284_v23 = vadd.f32 %v1276_v15, %v1272_v51  ;;  %v1279_v60 = vadd.f32 %v1275_v10, %v1267_v53  ;;  %v1280_v20 = vadd.f32 %v1276_v15, %v1268_v56 }
 0x2a9   :  { %v1277_v6 = vadd.f32 %v1273_v39, %v1265_v34  ;;  %v1278_v49 = vadd.f32 %v1274_v25, %v1266_v47  ;;  %v1281_v26 = vadd.f32 %v1273_v39, %v1269_v29  ;;  %v1282_v57 = vadd.f32 %v1274_v25, %v1270_v40  ;;  %1809 = vmatpush.bf16.msra.mxu1 %v2340_v59 }
 0x2aa   :  { %v1288_v63 = vpack.c.bf16 %v1284_v23, %v1283_v48  ;;  %1823 = vmatpush.bf16.msra.mxu2 %v2404_v14  ;;  %v1286_v28 = vpack.c.bf16 %v1280_v20, %v1279_v60  ;;  %v1395_v39 = vperm.slane %v128_v38, 1 }
 0x2ab   :  { %v1285_v62 = vpack.c.bf16 %v1278_v49, %v1277_v6  ;;  %v1287_v44 = vpack.c.bf16 %v1282_v57, %v1281_v26 }
 0x2ac   :  { %v1295_v35 = vunpack.c.l.bf16 %v1288_v63  ;;  %v1296_v33 = vunpack.c.h.bf16 %v1288_v63  ;;  %v1291_v50 = vunpack.c.l.bf16 %v1286_v28  ;;  %v1292_v8 = vunpack.c.h.bf16 %v1286_v28 }
 0x2ad   :  { %v1289_v37 = vunpack.c.l.bf16 %v1285_v62  ;;  %v1290_v0 = vunpack.c.h.bf16 %v1285_v62  ;;  %v1293_v5 = vunpack.c.l.bf16 %v1287_v44  ;;  %v1294_v7 = vunpack.c.h.bf16 %v1287_v44 }
 0x2ae   :  { %v1303_v43 = vmul.f32 0.20019531, %v1295_v35  ;;  %v1304_v12 = vmul.f32 0.20019531, %v1296_v33  ;;  %v1299_v24 = vmul.f32 0.20019531, %v1291_v50  ;;  %v1300_v27 = vmul.f32 0.20019531, %v1292_v8 }
 0x2af   :  { %v1297_v11 = vmul.f32 0.20019531, %v1289_v37  ;;  %v1298_v61 = vmul.f32 0.20019531, %v1290_v0  ;;  %v1301_v19 = vmul.f32 0.20019531, %v1293_v5  ;;  %v1302_v21 = vmul.f32 0.20019531, %v1294_v7 }
 0x2b0   :  { %v1323_v16 = vmax.f32 %v1295_v35, %v1303_v43  ;;  %v1324_v17 = vmax.f32 %v1296_v33, %v1304_v12  ;;  %v1319_v2 = vmax.f32 %v1291_v50, %v1299_v24  ;;  %v1320_v55 = vmax.f32 %v1292_v8, %v1300_v27 }
 0x2b1   :  { %v1317_v30 = vmax.f32 %v1289_v37, %v1297_v11  ;;  %v1318_v32 = vmax.f32 %v1290_v0, %v1298_v61  ;;  %v1321_v34 = vmax.f32 %v1293_v5, %v1301_v19  ;;  %v1322_v36 = vmax.f32 %v1294_v7, %v1302_v21 }
 0x2b2   :  { %v1327_v52 = vpack.c.bf16 %v1323_v16, %v1319_v2  ;;  %v1328_v54 = vpack.c.bf16 %v1324_v17, %v1320_v55 }
 0x2b3   :  { %v1325_v31 = vpack.c.bf16 %v1321_v34, %v1317_v30  ;;  %v1326_v18 = vpack.c.bf16 %v1322_v36, %v1318_v32 }
 0x2b4   :  { %1754 = vmatmul.bf16.vlgmr.msrb.gmra.mxu1 %v1327_v52  ;;  %1768 = vmatmul.bf16.vlgmr.msrb.gmra.mxu2 %v1328_v54 }
 0x2b5   :  { %1726 = vmatmul.bf16.vlgmr.msra.gmra.mxu3 %v1325_v31  ;;  %1740 = vmatmul.bf16.vlgmr.msrb.gmra.mxu0 %v1326_v18 }
 0x2c4   :  { %1810 = vmatmul.bf16.vlgmr.msra.gmra.mxu1 %v1327_v52  ;;  %1824 = vmatmul.bf16.vlgmr.msra.gmra.mxu2 %v1328_v54 }
 0x2c5   :  { %1782 = vmatmul.bf16.vlgmr.msrb.gmra.mxu3 %v1325_v31  ;;  %1796 = vmatmul.bf16.vlgmr.msra.gmra.mxu0 %v1326_v18 }
 0x331   :  { %v1755_v9 = vpop.f32.mrf.mxu1 }
 0x332   :  { %v1741_v3 = vpop.f32.mrf.mxu0 }
 0x337   :  { %v1769_v1 = vpop.f32.mrf.mxu2 }
 0x338   :  { %v1727_v47 = vpop.f32.mrf.mxu3 }
 0x339   :  { %v1728_v22 = vadd.f32 %v1727_v47, %v1394_v13  ;;  %v1757_v45 = vpop.f32.mrf.mxu1 }
 0x33a   :  { %v1743_v4 = vpop.f32.mrf.mxu0 }
 0x33b   :  { %v1742_v58 = vadd.f32 %v1741_v3, %v1728_v22 }
 0x33d   :  { %v1756_v41 = vadd.f32 %v1755_v9, %v1742_v58 }
 0x33f   :  { %v1770_v42 = vadd.f32 %v1769_v1, %v1756_v41  ;;  %v1771_v14 = vpop.f32.mrf.mxu2 }
 0x340   :  { %v1729_v46 = vpop.f32.mrf.mxu3 }
 0x341   :  { %v1830_v51 = vmul.f32 0.5, %v1770_v42  ;;  %v1730_v59 = vadd.f32 %v1729_v46, %v1394_v13  ;;  %v1811_v6 = vpop.f32.mrf.mxu1 }
 0x342   :  { %v1797_v29 = vpop.f32.mrf.mxu0 }
 0x343   :  { %2635 = vtanh.f32 %v1830_v51  ;;  %v1744_v10 = vadd.f32 %v1743_v4, %v1730_v59 }
 0x345   :  { %v1758_v15 = vadd.f32 %v1757_v45, %v1744_v10 }
 0x347   :  { %v1772_v25 = vadd.f32 %v1771_v14, %v1758_v15  ;;  %v1825_v57 = vpop.f32.mrf.mxu2 }
 0x348   :  { %v1783_v40 = vpop.f32.mrf.mxu3 }
 0x349   :  { %v2636_v53 = vpop.eup %2635  ;;  %v1832_v56 = vmul.f32 0.5, %v1772_v25  ;;  %v1784_v48 = vadd.f32 %v1783_v40, %v1395_v39  ;;  %v1813_v5 = vpop.f32.mrf.mxu1 }
 0x34a   :  { %v1838_v23 = vmul.f32 0.5, %v2636_v53  ;;  %v1799_v0 = vpop.f32.mrf.mxu0 }
 0x34b   :  { %2637 = vtanh.f32 %v1832_v56  ;;  %v1798_v49 = vadd.f32 %v1797_v29, %v1784_v48 }
 0x34c   :  { %v1842_v26 = vadd.f32 0.5, %v1838_v23 }
 0x34d   :  { %v1812_v60 = vadd.f32 %v1811_v6, %v1798_v49 }
 0x34e   :  { %1846 = vst [vmem:[#allocation13] sm:$0xff] %v1842_v26 }
 0x34f   :  { %v1826_v20 = vadd.f32 %v1825_v57, %v1812_v60  ;;  %v1827_v50 = vpop.f32.mrf.mxu2 }
 0x350   :  { %v1785_v62 = vpop.f32.mrf.mxu3 }
 0x351   :  { %v2638_v63 = vpop.eup %2637  ;;  %v1831_v44 = vmul.f32 0.5, %v1826_v20  ;;  %v1786_v28 = vadd.f32 %v1785_v62, %v1395_v39 }
 0x352   :  { %v1840_v37 = vmul.f32 0.5, %v2638_v63 }
 0x353   :  { %2639 = vtanh.f32 %v1831_v44  ;;  %v1800_v35 = vadd.f32 %v1799_v0, %v1786_v28 }
 0x354   :  { %v1844_v33 = vadd.f32 0.5, %v1840_v37 }
 0x355   :  { %v1814_v7 = vadd.f32 %v1813_v5, %v1800_v35 }
 0x356   :  { %1848 = vst [vmem:[#allocation13 + $0x10] sm:$0xff] %v1844_v33 }
 0x357   :  { %v1828_v8 = vadd.f32 %v1827_v50, %v1814_v7 }
 0x359   :  { %v2640_v11 = vpop.eup %2639  ;;  %v1833_v61 = vmul.f32 0.5, %v1828_v8 }
 0x35a   :  { %v1839_v43 = vmul.f32 0.5, %v2640_v11 }
 0x35b   :  { %2641 = vtanh.f32 %v1833_v61 }
 0x35c   :  { %v1843_v12 = vadd.f32 0.5, %v1839_v43 }
 0x35e   :  { %1847 = vst [vmem:[#allocation13 + $0x8] sm:$0xff] %v1843_v12 }
 0x361   :  { %v2642_v19 = vpop.eup %2641 }
 0x362   :  { %v1841_v21 = vmul.f32 0.5, %v2642_v19 }
 0x364   :  { %v1845_v24 = vadd.f32 0.5, %v1841_v21 }
 0x366   :  { %1849 = vst [vmem:[#allocation13 + $0x18] sm:$0xff] %v1845_v24 }
 0x367   :  { %1862 = dma.vmem_to_hbm [thread:$0]  %s1855_s5, 512, %s1857_s7, [#allocation4], %s2825_s9, %s2825_s9, %s2826_s10  }
 0x368   :  { %2819 = dma.done.wait [#allocation4], 512  }
 0x369   :  { %2820 = vsyncadd [#allocation4], 4294966784 }
 0x36a   :  { %1867 = vsyncpa [#allocation3], 1 }
 0x36b   :  { %1868 = vsyncpa [#allocation6], 1 }
 0x36c   :  { %1869 = vsyncpa [#allocation9], 1 }
 0x36d   :  { %1870 = vsyncpa [#allocation12], 1 }
 0x36e   :  { %1871 = vsyncpa [#allocation4], 1 }

</bundles_post_ra>
